<compile_context>
chip_gen: v7x
topology: tpu7x:2x2x1
jax: 0.10.0
libtpu: 0.0.40
codegen_flags: <defaults>
</compile_context>

<pallas_src>
import jax
import jax.numpy as jnp
from jax.experimental import pallas as pl
from jax.experimental.pallas import tpu as pltpu

_BN_EPS = 1e-5


# ----------------------------------------------------------------------------
# small helpers
# ----------------------------------------------------------------------------
def _round_up(x, m):
    return ((x + m - 1) // m) * m


def _pick_tm(m):
    if m >= 512:
        return 256
    if m >= 128:
        return 128
    return _round_up(max(m, 8), 8)          # == padded M (full-dim block)


def _pick_tk(kp):
    for t in (2048, 1024, 512, 256, 128):
        if kp % t == 0:
            return t
    return 128


def _pick_tn(np_):
    return 256 if np_ % 256 == 0 else 128


def _pick_rows_tile(m):
    for t in (1024, 512, 256):
        if m % t == 0:
            return t
    return m                                 # full-dim block (small layers)


def _apply_act(z, act):
    if act == "lrelu":
        return jnp.where(z >= 0.0, z, 0.2 * z)
    if act == "relu":
        return jnp.maximum(z, 0.0)
    if act == "tanh":
        return jnp.tanh(z)
    return z


# ----------------------------------------------------------------------------
# Pallas kernel 1: grouped tiled matmul (bf16 x bf16 -> f32 acc) with the
# per-channel BN statistics (sum, sum of squares) fused into the epilogue.
# Grid: (G, N_tiles, M_tiles, K_tiles).  Stats are accumulated across M tiles.
# ----------------------------------------------------------------------------
def _mm_stats_kernel(x_ref, w_ref, z_ref, s1_ref, s2_ref, acc_ref):
    i = pl.program_id(2)
    k = pl.program_id(3)
    nk = pl.num_programs(3)

    @pl.when(k == 0)
    def _():
        acc_ref[...] = jnp.zeros_like(acc_ref)

    acc_ref[...] += jnp.dot(x_ref[...], w_ref[...],
                            preferred_element_type=jnp.float32)

    @pl.when(k == nk - 1)
    def _():
        z = acc_ref[...]
        z_ref[...] = z.astype(z_ref.dtype)
        ps1 = jnp.sum(z, axis=0, keepdims=True)
        ps2 = jnp.sum(z * z, axis=0, keepdims=True)

        @pl.when(i == 0)
        def _():
            s1_ref[...] = ps1
            s2_ref[...] = ps2

        @pl.when(i > 0)
        def _():
            s1_ref[...] = s1_ref[...] + ps1
            s2_ref[...] = s2_ref[...] + ps2


# ----------------------------------------------------------------------------
# Pallas kernel 2: grouped tiled matmul with bias + activation fused into the
# epilogue (used for the two layers without BatchNorm).
# ----------------------------------------------------------------------------
def _make_mm_bias_act_kernel(act):
    def kernel(x_ref, w_ref, b_ref, z_ref, acc_ref):
        k = pl.program_id(3)
        nk = pl.num_programs(3)

        @pl.when(k == 0)
        def _():
            acc_ref[...] = jnp.zeros_like(acc_ref)

        acc_ref[...] += jnp.dot(x_ref[...], w_ref[...],
                                preferred_element_type=jnp.float32)

        @pl.when(k == nk - 1)
        def _():
            z = acc_ref[...] + b_ref[...]
            z_ref[...] = _apply_act(z, act).astype(z_ref.dtype)

    return kernel


# ----------------------------------------------------------------------------
# Pallas kernel 3: tiled per-channel affine (BN scale/shift) + activation.
# ----------------------------------------------------------------------------
def _make_affine_act_kernel(act):
    def kernel(z_ref, sc_ref, sh_ref, o_ref):
        z = z_ref[...].astype(jnp.float32)
        z = z * sc_ref[...] + sh_ref[...]
        o_ref[...] = _apply_act(z, act).astype(o_ref.dtype)

    return kernel


# ----------------------------------------------------------------------------
# pallas_call wrappers
# ----------------------------------------------------------------------------
def _pad_rows(rows, kp):
    """rows [G, M, K] -> bf16 [G, Mp, Kp] (zero padding), plus tile size tm."""
    _, m, k = rows.shape
    tm = _pick_tm(m)
    mp = _round_up(m, tm)
    rows = jnp.pad(rows, ((0, 0), (0, mp - m), (0, kp - k)))
    return rows.astype(jnp.bfloat16), tm


def matmul_stats(rows, wmat):
    """rows [G, M, K]; wmat [G, Kp, Np] bf16 -> z [G, Mp, Np] bf16,
    s1/s2 [G, 1, Np] f32 (per-group channel sums over the true M rows)."""
    g, kp, np_ = wmat.shape
    x, tm = _pad_rows(rows, kp)
    mp = x.shape[1]
    tk, tn = _pick_tk(kp), _pick_tn(np_)
    grid = (g, np_ // tn, mp // tm, kp // tk)
    return pl.pallas_call(
        _mm_stats_kernel,
        out_shape=(
            jax.ShapeDtypeStruct((g, mp, np_), jnp.bfloat16),
            jax.ShapeDtypeStruct((g, 1, np_), jnp.float32),
            jax.ShapeDtypeStruct((g, 1, np_), jnp.float32),
        ),
        grid_spec=pltpu.PrefetchScalarGridSpec(
            num_scalar_prefetch=0,
            grid=grid,
            in_specs=[
                pl.BlockSpec((None, tm, tk), lambda g, j, i, k: (g, i, k)),
                pl.BlockSpec((None, tk, tn), lambda g, j, i, k: (g, k, j)),
            ],
            out_specs=[
                pl.BlockSpec((None, tm, tn), lambda g, j, i, k: (g, i, j)),
                pl.BlockSpec((None, 1, tn), lambda g, j, i, k: (g, 0, j)),
                pl.BlockSpec((None, 1, tn), lambda g, j, i, k: (g, 0, j)),
            ],
            scratch_shapes=[pltpu.VMEM((tm, tn), jnp.float32)],
        ),
        compiler_params=pltpu.CompilerParams(
            dimension_semantics=("parallel", "parallel", "arbitrary", "arbitrary")),
    )(x, wmat)


def matmul_bias_act(rows, wmat, bias, act):
    """rows [G, M, K]; wmat [G, Kp, Np]; bias [1, Np] -> act(rows@wmat+bias)."""
    g, kp, np_ = wmat.shape
    x, tm = _pad_rows(rows, kp)
    mp = x.shape[1]
    tk, tn = _pick_tk(kp), _pick_tn(np_)
    grid = (g, np_ // tn, mp // tm, kp // tk)
    return pl.pallas_call(
        _make_mm_bias_act_kernel(act),
        out_shape=jax.ShapeDtypeStruct((g, mp, np_), jnp.bfloat16),
        grid_spec=pltpu.PrefetchScalarGridSpec(
            num_scalar_prefetch=0,
            grid=grid,
            in_specs=[
                pl.BlockSpec((None, tm, tk), lambda g, j, i, k: (g, i, k)),
                pl.BlockSpec((None, tk, tn), lambda g, j, i, k: (g, k, j)),
                pl.BlockSpec((1, tn), lambda g, j, i, k: (0, j)),
            ],
            out_specs=pl.BlockSpec((None, tm, tn), lambda g, j, i, k: (g, i, j)),
            scratch_shapes=[pltpu.VMEM((tm, tn), jnp.float32)],
        ),
        compiler_params=pltpu.CompilerParams(
            dimension_semantics=("parallel", "parallel", "parallel", "arbitrary")),
    )(x, wmat, bias)


def affine_act(z, scale, shift, act):
    """z [M, Np] bf16; scale/shift [Np] f32 -> bf16 [M, Np]."""
    m, np_ = z.shape
    tm = _pick_rows_tile(m)
    return pl.pallas_call(
        _make_affine_act_kernel(act),
        out_shape=jax.ShapeDtypeStruct((m, np_), jnp.bfloat16),
        grid=(m // tm,),
        in_specs=[
            pl.BlockSpec((tm, np_), lambda i: (i, 0)),
            pl.BlockSpec((1, np_), lambda i: (0, 0)),
            pl.BlockSpec((1, np_), lambda i: (0, 0)),
        ],
        out_specs=pl.BlockSpec((tm, np_), lambda i: (i, 0)),
        compiler_params=pltpu.CompilerParams(dimension_semantics=("parallel",)),
    )(z, scale.reshape(1, np_), shift.reshape(1, np_))


# ----------------------------------------------------------------------------
# im2col glue (plain JAX data movement, NHWC)
# ----------------------------------------------------------------------------
def _im2col_nhwc(x, k, stride, pad):
    """x [B,H,W,C] -> rows [B*Ho*Wo, k*k*C] (K order: kh, kw, c)."""
    B, H, W, C = x.shape
    if pad:
        x = jnp.pad(x, ((0, 0), (pad, pad), (pad, pad), (0, 0)))
    Ho = (H + 2 * pad - k) // stride + 1
    Wo = (W + 2 * pad - k) // stride + 1
    pats = []
    for di in range(k):
        for dj in range(k):
            pats.append(x[:, di:di + stride * (Ho - 1) + 1:stride,
                          dj:dj + stride * (Wo - 1) + 1:stride, :])
    p = jnp.stack(pats, axis=3)                       # [B, Ho, Wo, k*k, C]
    return p.reshape(B * Ho * Wo, k * k * C), (B, Ho, Wo)


# Sub-pixel decomposition of ConvTranspose2d(k=4, stride=2, padding=1):
#   y[2m+0] = w[3]*x[m-1] + w[1]*x[m]      (per spatial dim)
#   y[2m+1] = w[2]*x[m]   + w[0]*x[m+1]
# so each output phase (ry, rx) is a dense 2x2 stride-1 conv over x.
_CT_TAPS = ((3, 1), (2, 0))


def _im2col_convt_phases(x):
    """x [B,H,W,C] -> rows [4, B*H*W, 4*C]  (phase = ry*2+rx; K order: a, b, c)."""
    B, H, W, C = x.shape
    xp = jnp.pad(x, ((0, 0), (1, 1), (1, 1), (0, 0)))
    phases = []
    for ry in range(2):
        for rx in range(2):
            pats = []
            for a in range(2):
                for b in range(2):
                    pats.append(xp[:, ry + a:ry + a + H, rx + b:rx + b + W, :])
            p = jnp.stack(pats, axis=3)               # [B, H, W, 4, C]
            phases.append(p.reshape(B * H * W, 4 * C))
    return jnp.stack(phases, axis=0), (B, H, W)


# ----------------------------------------------------------------------------
# netG: layer configs, parameter init, hoisted weight preprocessing, forward
# ----------------------------------------------------------------------------
# (type, C_in, C_out, k, stride, pad, use_bn, act)
LAYERS = [
    ("conv",   3,   64, 4, 2, 1, False, "lrelu"),
    ("conv",   64,  64, 4, 2, 1, True,  "lrelu"),
    ("conv",   64, 128, 4, 2, 1, True,  "lrelu"),
    ("conv",  128, 256, 4, 2, 1, True,  "lrelu"),
    ("conv",  256, 512, 4, 2, 1, True,  "lrelu"),
    ("conv",  512, 100, 1, 1, 0, True,  "lrelu"),
    ("convT", 100, 512, 1, 1, 0, True,  "relu"),
    ("convT", 512, 256, 4, 2, 1, True,  "relu"),
    ("convT", 256, 128, 4, 2, 1, True,  "relu"),
    ("convT", 128,  64, 4, 2, 1, True,  "relu"),
    ("convT",  64,  64, 4, 2, 1, True,  "relu"),
    ("convT",  64,   3, 4, 2, 1, False, "tanh"),
]


def init_params(key):
    """Mirrors netG.init_param(): conv/convT weights ~ N(0, 0.02), bias = 0,
    BN gamma ~ N(1, 0.02), beta = 0."""
    params = []
    for (ltype, cin, cout, k, _s, _p, use_bn, _act) in LAYERS:
        key, kw, kg = jax.random.split(key, 3)
        wshape = (cout, cin, k, k) if ltype == "conv" else (cin, cout, k, k)
        w = 0.02 * jax.random.normal(kw, wshape, jnp.float32)
        b = jnp.zeros((cout,), jnp.float32)
        gamma = (1.0 + 0.02 * jax.random.normal(kg, (cout,), jnp.float32)
                 if use_bn else jnp.ones((cout,), jnp.float32))
        beta = jnp.zeros((cout,), jnp.float32)
        params.append({"w": w, "b": b, "gamma": gamma, "beta": beta})
    return params


def _prepare_layer(p, cfg):
    """Hoisted (once-per-model) weight preprocessing: [K, N] layout, K/N padding
    to multiples of 128, bf16 cast, sub-pixel phase weights for stride-2 convT."""
    ltype, cin, cout, k, stride, pad, use_bn, _act = cfg
    w = p["w"].astype(jnp.float32)
    if ltype == "conv":
        wm = jnp.transpose(w, (2, 3, 1, 0)).reshape(1, k * k * cin, cout)
    elif stride == 1 and k == 1:                       # 1x1 ConvTranspose
        wm = w[:, :, 0, 0].reshape(1, cin, cout)
    else:
        assert k == 4 and stride == 2 and pad == 1
        mats = []
        for ry in range(2):
            for rx in range(2):
                rr = jnp.array(_CT_TAPS[ry], jnp.int32)[:, None]
                cc = jnp.array(_CT_TAPS[rx], jnp.int32)[None, :]
                sub = w[:, :, rr, cc]                  # [cin, cout, 2, 2]
                mats.append(jnp.transpose(sub, (2, 3, 0, 1)).reshape(4 * cin, cout))
        wm = jnp.stack(mats, axis=0)                   # [4, 4*cin, cout]
    K = wm.shape[1]
    Kp = _round_up(K, 128)
    Np = _round_up(cout, 128)
    wm = jnp.pad(wm, ((0, 0), (0, Kp - K), (0, Np - cout))).astype(jnp.bfloat16)
    lp = {"wmat": wm}
    if use_bn:
        # conv bias is exactly cancelled by the BN mean subtraction -> dropped.
        lp["gamma"] = jnp.pad(p["gamma"].astype(jnp.float32), (0, Np - cout))
        lp["beta"] = jnp.pad(p["beta"].astype(jnp.float32), (0, Np - cout))
    else:
        lp["bias"] = jnp.pad(p["b"].astype(jnp.float32),
                             (0, Np - cout)).reshape(1, Np)
    return lp


def prepare_params(params):
    return [_prepare_layer(p, cfg) for p, cfg in zip(params, LAYERS)]


def _layer_forward(x, lp, cfg):
    """One layer: x [B, H, W, Cin] bf16 -> [B, Ho, Wo, Cout] bf16."""
    ltype, cin, cout, k, stride, pad, use_bn, act = cfg
    B = x.shape[0]

    if ltype == "conv":
        rows, (_, Ho, Wo) = _im2col_nhwc(x, k, stride, pad)
        rows = rows[None]
        interleave = None
    elif stride == 1 and k == 1:                       # 1x1 ConvTranspose
        _, H, W, _ = x.shape
        rows = x.reshape(1, B * H * W, cin)
        Ho, Wo = H, W
        interleave = None
    else:                                              # stride-2 convT, sub-pixel
        rows, (_, H, W) = _im2col_convt_phases(x)
        Ho, Wo = 2 * H, 2 * W
        interleave = (H, W)

    G, M1, _ = rows.shape
    wmat = lp["wmat"]
    Np = wmat.shape[-1]

    if use_bn:
        z, s1, s2 = matmul_stats(rows, wmat)
        Mp = z.shape[1]
        m_tot = float(G * M1)                          # true rows == B*Ho*Wo
        s1 = jnp.sum(s1, axis=(0, 1))
        s2 = jnp.sum(s2, axis=(0, 1))
        mean = s1 / m_tot
        var = jnp.maximum(s2 / m_tot - mean * mean, 0.0)
        inv = jax.lax.rsqrt(var + _BN_EPS)
        scale = lp["gamma"] * inv
        shift = lp["beta"] - mean * scale
        y = affine_act(z.reshape(G * Mp, Np), scale, shift, act).reshape(G, Mp, Np)
    else:
        y = matmul_bias_act(rows, wmat, lp["bias"], act)
        Mp = y.shape[1]

    y = y[:, :M1, :cout]                               # drop padded rows/channels
    if interleave is None:
        y = y.reshape(B, Ho, Wo, cout)
    else:
        H, W = interleave
        y = y.reshape(2, 2, B, H, W, cout)
        y = y.transpose(2, 3, 0, 4, 1, 5).reshape(B, Ho, Wo, cout)
    return y


def netG_forward(prepared, x_nchw):
    """x: [B, 3, H, W] NCHW f32 (H, W divisible by 32) -> [B, 3, H, W] f32."""
    x = jnp.transpose(x_nchw, (0, 2, 3, 1)).astype(jnp.bfloat16)
    for cfg, lp in zip(LAYERS, prepared):
        x = _layer_forward(x, lp, cfg)
    return jnp.transpose(x, (0, 3, 1, 2)).astype(jnp.float32)


# ----------------------------------------------------------------------------
# plain-JAX reference (for self-checks only)
# ----------------------------------------------------------------------------
def _ref_layer(x, p, cfg):
    """PyTorch training-mode semantics via lax.conv (bf16 operands, f32 acc)."""
    ltype, _cin, cout, k, stride, pad, use_bn, act = cfg
    xb = x.astype(jnp.bfloat16)
    if ltype == "conv":
        wb = p["w"].astype(jnp.bfloat16)
        z = jax.lax.conv_general_dilated(
            xb, wb, window_strides=(stride, stride),
            padding=[(pad, pad), (pad, pad)],
            dimension_numbers=("NHWC", "OIHW", "NHWC"),
            preferred_element_type=jnp.float32)
    else:
        wc = jnp.flip(p["w"], axis=(2, 3)).transpose(1, 0, 2, 3).astype(jnp.bfloat16)
        z = jax.lax.conv_general_dilated(
            xb, wc, window_strides=(1, 1),
            padding=[(k - 1 - pad, k - 1 - pad)] * 2,
            lhs_dilation=(stride, stride),
            dimension_numbers=("NHWC", "OIHW", "NHWC"),
            preferred_element_type=jnp.float32)
    z = z + p["b"].reshape(1, 1, 1, cout)
    if use_bn:
        mean = jnp.mean(z, axis=(0, 1, 2), keepdims=True)
        var = jnp.mean(jnp.square(z - mean), axis=(0, 1, 2), keepdims=True)
        z = (z - mean) * jax.lax.rsqrt(var + _BN_EPS)
        z = z * p["gamma"].reshape(1, 1, 1, cout) + p["beta"].reshape(1, 1, 1, cout)
    return _apply_act(z, act)


def _rand_layer_params(key, cfg):
    ltype, cin, cout, k, _s, _p, _bn, _act = cfg
    k1, k2, k3, k4 = jax.random.split(key, 4)
    wshape = (cout, cin, k, k) if ltype == "conv" else (cin, cout, k, k)
    return {
        "w": 0.05 * jax.random.normal(k1, wshape, jnp.float32),
        "b": 0.1 * jax.random.normal(k2, (cout,), jnp.float32),
        "gamma": 1.0 + 0.1 * jax.random.normal(k3, (cout,), jnp.float32),
        "beta": 0.1 * jax.random.normal(k4, (cout,), jnp.float32),
    }


def _run_layer_checks(key):
    checks = [
        (("conv", 96, 384, 4, 2, 1, True, "lrelu"), 32),   # fused stats, multi-tile
        (("convT", 96, 72, 4, 2, 1, True, "relu"), 16),    # sub-pixel convT + BN
        (("convT", 64, 3, 4, 2, 1, False, "tanh"), 8),     # fused bias+act, N=3 pad
    ]
    for n, (cfg, hw) in enumerate(checks):
        key, kx, kp = jax.random.split(key, 3)
        x = jax.random.normal(kx, (2, hw, hw, cfg[1]), jnp.float32)
        p = _rand_layer_params(kp, cfg)
        lp = _prepare_layer(p, cfg)
        got = _layer_forward(x.astype(jnp.bfloat16), lp, cfg).astype(jnp.float32)
        ref = _ref_layer(x, p, cfg)
        assert got.shape == ref.shape, (got.shape, ref.shape)
        err = float(jnp.max(jnp.abs(got - ref)))
        assert err < 0.1, f"layer self-check {n} failed: max abs err {err}"


# ----------------------------------------------------------------------------
if __name__ == "__main__":
    key = jax.random.PRNGKey(0)

    # per-layer self-checks against a plain-JAX reference
    key, kc = jax.random.split(key)
    _run_layer_checks(kc)

    # full netG forward: batch=2, 3 channels, 32x32 (encoder 32 -> 1 -> 32)
    key, kx, kp = jax.random.split(key, 3)
    x = jax.random.normal(kx, (2, 3, 32, 32), jnp.float32)
    params = init_params(kp)
    prepared = prepare_params(params)        # weight preprocessing hoisted (once)

    fwd = jax.jit(netG_forward)
    out = jax.block_until_ready(fwd(prepared, x))

    assert out.shape == (2, 3, 32, 32), out.shape
    assert out.dtype == jnp.float32
    assert bool(jnp.all(jnp.isfinite(out)))
    assert bool(jnp.all(jnp.abs(out) <= 1.0 + 1e-6))   # tanh output range
    print("KERNEL_OK")
</pallas_src>

<mosaic_0001>
module attributes {stable_mosaic.version = 11 : i64} {
  func.func @_mm_stats_kernel(%arg0: i32, %arg1: i32, %arg2: i32, %arg3: i32, %arg4: memref<1x256x512xbf16, #tpu.memory_space<vmem>>, %arg5: memref<1x512x128xbf16, #tpu.memory_space<vmem>>, %arg6: memref<1x256x128xbf16, #tpu.memory_space<vmem>>, %arg7: memref<1x1x128xf32, #tpu.memory_space<vmem>>, %arg8: memref<1x1x128xf32, #tpu.memory_space<vmem>>, %arg9: memref<256x128xf32, #tpu.memory_space<vmem>>) attributes {dimension_semantics = [#tpu.dimension_semantics<parallel>, #tpu.dimension_semantics<parallel>, #tpu.dimension_semantics<arbitrary>, #tpu.dimension_semantics<arbitrary>], iteration_bounds = array<i64: 1, 3, 2, 3>, scalar_prefetch = 0 : i64, scratch_operands = 1 : i64, tpu.core_type = #tpu.core_type<tc>, window_params = [{transform_indices = @transform_0, window_bounds = array<i64: 1, 256, 512>}, {transform_indices = @transform_1, window_bounds = array<i64: 1, 512, 128>}, {transform_indices = @transform_2, window_bounds = array<i64: 1, 256, 128>}, {transform_indices = @transform_3, window_bounds = array<i64: 1, 1, 128>}, {transform_indices = @transform_4, window_bounds = array<i64: 1, 1, 128>}]} {
    %c0_i32 = arith.constant 0 : i32
    %0 = arith.cmpi eq, %arg3, %c0_i32 : i32
    %1 = arith.extui %0 : i1 to i32
    %c0_i32_0 = arith.constant 0 : i32
    %2 = arith.cmpi ne, %1, %c0_i32_0 : i32
    scf.if %2 {
      %cst_11 = arith.constant 0.000000e+00 : f32
      %14 = vector.broadcast %cst_11 : f32 to vector<256x128xf32>
      %c0_12 = arith.constant 0 : index
      %c0_13 = arith.constant 0 : index
      %15 = vector.load %arg9[%c0_12, %c0_13] : memref<256x128xf32, #tpu.memory_space<vmem>>, vector<256x128xf32>
      tpu.vector_store %arg9[%c0_12, %c0_13], %14 {strides = array<i32>} : memref<256x128xf32, #tpu.memory_space<vmem>>, vector<256x128xf32>,
    } else {
    }
    %c0 = arith.constant 0 : index
    %c0_1 = arith.constant 0 : index
    %3 = vector.load %arg9[%c0, %c0_1] : memref<256x128xf32, #tpu.memory_space<vmem>>, vector<256x128xf32>
    %c0_2 = arith.constant 0 : index
    %c0_3 = arith.constant 0 : index
    %c0_4 = arith.constant 0 : index
    %4 = vector.load %arg4[%c0_2, %c0_3, %c0_4] : memref<1x256x512xbf16, #tpu.memory_space<vmem>>, vector<1x256x512xbf16>
    %5 = vector.shape_cast %4 : vector<1x256x512xbf16> to vector<256x512xbf16>
    %c0_5 = arith.constant 0 : index
    %c0_6 = arith.constant 0 : index
    %c0_7 = arith.constant 0 : index
    %6 = vector.load %arg5[%c0_5, %c0_6, %c0_7] : memref<1x512x128xbf16, #tpu.memory_space<vmem>>, vector<1x512x128xbf16>
    %7 = vector.shape_cast %6 : vector<1x512x128xbf16> to vector<512x128xbf16>
    %cst = arith.constant dense<0.000000e+00> : vector<256x128xf32>
    %8 = tpu.matmul %5, %7, %cst {dimension_numbers = #tpu.dot_dimension_numbers<[1], [0], [0], [1], [0, 0, 1, 1], [], []>} : vector<256x512xbf16>, vector<512x128xbf16>, vector<256x128xf32> -> vector<256x128xf32>
    %9 = arith.addf %3, %8 : vector<256x128xf32>
    %c0_8 = arith.constant 0 : index
    %c0_9 = arith.constant 0 : index
    %10 = vector.load %arg9[%c0_8, %c0_9] : memref<256x128xf32, #tpu.memory_space<vmem>>, vector<256x128xf32>
    tpu.vector_store %arg9[%c0_8, %c0_9], %9 {strides = array<i32>} : memref<256x128xf32, #tpu.memory_space<vmem>>, vector<256x128xf32>,
    %c2_i32 = arith.constant 2 : i32
    %11 = arith.cmpi eq, %arg3, %c2_i32 : i32
    %12 = arith.extui %11 : i1 to i32
    %c0_i32_10 = arith.constant 0 : i32
    %13 = arith.cmpi ne, %12, %c0_i32_10 : i32
    scf.if %13 {
      %c0_11 = arith.constant 0 : index
      %c0_12 = arith.constant 0 : index
      %14 = vector.load %arg9[%c0_11, %c0_12] : memref<256x128xf32, #tpu.memory_space<vmem>>, vector<256x128xf32>
      %15 = arith.truncf %14 : vector<256x128xf32> to vector<256x128xbf16>
      %c0_13 = arith.constant 0 : index
      %c0_14 = arith.constant 0 : index
      %c0_15 = arith.constant 0 : index
      %16 = vector.load %arg6[%c0_13, %c0_14, %c0_15] : memref<1x256x128xbf16, #tpu.memory_space<vmem>>, vector<1x256x128xbf16>
      %17 = vector.shape_cast %16 : vector<1x256x128xbf16> to vector<256x128xbf16>
      %18 = vector.shape_cast %15 : vector<256x128xbf16> to vector<1x256x128xbf16>
      tpu.vector_store %arg6[%c0_13, %c0_14, %c0_15], %18 {strides = array<i32>} : memref<1x256x128xbf16, #tpu.memory_space<vmem>>, vector<1x256x128xbf16>,
      %cst_16 = arith.constant dense<0.000000e+00> : vector<128xf32>
      %19 = vector.multi_reduction <add>, %14, %cst_16 [0] : vector<256x128xf32> to vector<128xf32>
      %20 = vector.shape_cast %19 : vector<128xf32> to vector<1x128xf32>
      %21 = arith.mulf %14, %14 : vector<256x128xf32>
      %cst_17 = arith.constant dense<0.000000e+00> : vector<128xf32>
      %22 = vector.multi_reduction <add>, %21, %cst_17 [0] : vector<256x128xf32> to vector<128xf32>
      %23 = vector.shape_cast %22 : vector<128xf32> to vector<1x128xf32>
      %c0_i32_18 = arith.constant 0 : i32
      %24 = arith.cmpi eq, %arg2, %c0_i32_18 : i32
      %25 = arith.extui %24 : i1 to i32
      %c0_i32_19 = arith.constant 0 : i32
      %26 = arith.cmpi ne, %25, %c0_i32_19 : i32
      scf.if %26 {
        %c0_22 = arith.constant 0 : index
        %c0_23 = arith.constant 0 : index
        %c0_24 = arith.constant 0 : index
        %30 = vector.load %arg7[%c0_22, %c0_23, %c0_24] : memref<1x1x128xf32, #tpu.memory_space<vmem>>, vector<1x1x128xf32>
        %31 = vector.shape_cast %30 : vector<1x1x128xf32> to vector<1x128xf32>
        %32 = vector.shape_cast %20 : vector<1x128xf32> to vector<1x1x128xf32>
        tpu.vector_store %arg7[%c0_22, %c0_23, %c0_24], %32 {strides = array<i32>} : memref<1x1x128xf32, #tpu.memory_space<vmem>>, vector<1x1x128xf32>,
        %c0_25 = arith.constant 0 : index
        %c0_26 = arith.constant 0 : index
        %c0_27 = arith.constant 0 : index
        %33 = vector.load %arg8[%c0_25, %c0_26, %c0_27] : memref<1x1x128xf32, #tpu.memory_space<vmem>>, vector<1x1x128xf32>
        %34 = vector.shape_cast %33 : vector<1x1x128xf32> to vector<1x128xf32>
        %35 = vector.shape_cast %23 : vector<1x128xf32> to vector<1x1x128xf32>
        tpu.vector_store %arg8[%c0_25, %c0_26, %c0_27], %35 {strides = array<i32>} : memref<1x1x128xf32, #tpu.memory_space<vmem>>, vector<1x1x128xf32>,
      } else {
      }
      %c0_i32_20 = arith.constant 0 : i32
      %27 = arith.cmpi sgt, %arg2, %c0_i32_20 : i32
      %28 = arith.extui %27 : i1 to i32
      %c0_i32_21 = arith.constant 0 : i32
      %29 = arith.cmpi ne, %28, %c0_i32_21 : i32
      scf.if %29 {
        %c0_22 = arith.constant 0 : index
        %c0_23 = arith.constant 0 : index
        %c0_24 = arith.constant 0 : index
        %30 = vector.load %arg7[%c0_22, %c0_23, %c0_24] : memref<1x1x128xf32, #tpu.memory_space<vmem>>, vector<1x1x128xf32>
        %31 = vector.shape_cast %30 : vector<1x1x128xf32> to vector<1x128xf32>
        %32 = arith.addf %31, %20 : vector<1x128xf32>
        %c0_25 = arith.constant 0 : index
        %c0_26 = arith.constant 0 : index
        %c0_27 = arith.constant 0 : index
        %33 = vector.load %arg7[%c0_25, %c0_26, %c0_27] : memref<1x1x128xf32, #tpu.memory_space<vmem>>, vector<1x1x128xf32>
        %34 = vector.shape_cast %33 : vector<1x1x128xf32> to vector<1x128xf32>
        %35 = vector.shape_cast %32 : vector<1x128xf32> to vector<1x1x128xf32>
        tpu.vector_store %arg7[%c0_25, %c0_26, %c0_27], %35 {strides = array<i32>} : memref<1x1x128xf32, #tpu.memory_space<vmem>>, vector<1x1x128xf32>,
        %c0_28 = arith.constant 0 : index
        %c0_29 = arith.constant 0 : index
        %c0_30 = arith.constant 0 : index
        %36 = vector.load %arg8[%c0_28, %c0_29, %c0_30] : memref<1x1x128xf32, #tpu.memory_space<vmem>>, vector<1x1x128xf32>
        %37 = vector.shape_cast %36 : vector<1x1x128xf32> to vector<1x128xf32>
        %38 = arith.addf %37, %23 : vector<1x128xf32>
        %c0_31 = arith.constant 0 : index
        %c0_32 = arith.constant 0 : index
        %c0_33 = arith.constant 0 : index
        %39 = vector.load %arg8[%c0_31, %c0_32, %c0_33] : memref<1x1x128xf32, #tpu.memory_space<vmem>>, vector<1x1x128xf32>
        %40 = vector.shape_cast %39 : vector<1x1x128xf32> to vector<1x128xf32>
        %41 = vector.shape_cast %38 : vector<1x128xf32> to vector<1x1x128xf32>
        tpu.vector_store %arg8[%c0_31, %c0_32, %c0_33], %41 {strides = array<i32>} : memref<1x1x128xf32, #tpu.memory_space<vmem>>, vector<1x1x128xf32>,
      } else {
      }
    } else {
    }
    return
  }
  func.func @transform_0(%arg0: i32, %arg1: i32, %arg2: i32, %arg3: i32) -> (i32, i32, i32) {
    %c0_i32 = arith.constant 0 : i32
    return %arg0, %arg2, %arg3 : i32, i32, i32
  }
  func.func @transform_1(%arg0: i32, %arg1: i32, %arg2: i32, %arg3: i32) -> (i32, i32, i32) {
    %c0_i32 = arith.constant 0 : i32
    return %arg0, %arg3, %arg1 : i32, i32, i32
  }
  func.func @transform_2(%arg0: i32, %arg1: i32, %arg2: i32, %arg3: i32) -> (i32, i32, i32) {
    %c0_i32 = arith.constant 0 : i32
    return %arg0, %arg2, %arg1 : i32, i32, i32
  }
  func.func @transform_3(%arg0: i32, %arg1: i32, %arg2: i32, %arg3: i32) -> (i32, i32, i32) {
    %c0_i32 = arith.constant 0 : i32
    %c0_i32_0 = arith.constant 0 : i32
    return %arg0, %c0_i32, %arg1 : i32, i32, i32
  }
  func.func @transform_4(%arg0: i32, %arg1: i32, %arg2: i32, %arg3: i32) -> (i32, i32, i32) {
    %c0_i32 = arith.constant 0 : i32
    %c0_i32_0 = arith.constant 0 : i32
    return %arg0, %c0_i32, %arg1 : i32, i32, i32
  }
}

</mosaic_0001>

<bundles_post_ra>
// kernel: tpu_custom_call.1
= control target key start
LH: loop header
LB: loop body
LE: loop exit
PB: predicated region body
PF: predicated region fallthrough
CT: control target
= control target key end

     0   :  { %s3932_s0 = inlined_call_operand.hbm [shape: bf16[1,512,1536], index: 0, kind: input, shape index: {}]   ;;  %s3933_s1 = inlined_call_operand.hbm [shape: bf16[1,1536,384], index: 1, kind: input, shape index: {}]   ;;  %s3934_s2 = inlined_call_operand.hbm [shape: bf16[1,512,384], index: 2, kind: output, shape index: {0}]   ;;  %s3935_s3 = inlined_call_operand.hbm [shape: f32[1,1,384], index: 3, kind: output, shape index: {1}]   ;;  %s3936_s4 = inlined_call_operand.hbm [shape: f32[1,1,384], index: 4, kind: output, shape index: {2}]  }
   0x1   :  { %3969 = sst [smem:[#allocation32_spill]] %s3932_s0 }
   0x2   :  { %3970 = sst [smem:[#allocation33_spill]] %s3933_s1 }
   0x3   :  { %3971 = sst [smem:[#allocation34_spill]] %s3934_s2 }
   0x4   :  { %3972 = sst [smem:[#allocation35_spill]] %s3935_s3 }
   0x5   :  { %3973 = sst [smem:[#allocation36_spill]] %s3936_s4 }
   0x6   :  { %10 = vsyncpa [#allocation4], 0 }
   0x7   :  { %12 = vsyncpa [#allocation4 + $0x1], 0 }
   0x8   :  { %13 = vsyncpa [#allocation7], 0 }
   0x9   :  { %15 = vsyncpa [#allocation7 + $0x1], 0 }
   0xa   :  { %16 = vsyncpa [#allocation5], 0 }
   0xb   :  { %18 = vsyncpa [#allocation5 + $0x1], 0 }
   0xc   :  { %19 = vsyncpa [#allocation10], 0 }
   0xd   :  { %21 = vsyncpa [#allocation10 + $0x1], 0  ;;  %s3164_s15 = smov 0   ;;  %s3166_s16 = smov 0  }
   0xe   :  { %s3168_s17 = smov 0   ;;  %s3170_s18 = smov 0  }
   0xf   :  { %s3172_s19 = smov 0   ;;  %s3174_s20 = smov 0  }
  0x10   :  { %s3176_s21 = smov 0   ;;  %s3178_s22 = smov 0  }
  0x11   :  { %s3180_s23 = smov 0   ;;  %s3182_s24 = smov 0  }
  0x12   :  { %s3184_s25 = smov 0   ;;  %s3186_s26 = smov 0  }
  0x13   :  { %s3188_s27 = smov 0   ;;  %s3190_s28 = smov 0  }
  0x14   :  { %s3192_s29 = smov 0   ;;  %s3194_s30 = smov 0  }
  0x15   :  { %s3196_s5 = smov 0   ;;  %s3198_s6 = smov 0  }
  0x16   :  { %s3200_s7 = smov 0  }
  0x17 LB: > { %3974 = sst [smem:[#allocation16_spill]] %s3050_s15  ;;  %s3258_s8 = sadd.s32 4294967295, %s3122_s7   ;;  %s3122_s7 = sphi %s3200_s7, %s27_s7   ;;  %s3118_s6 = sphi %s3198_s6, %s4052_s6   ;;  %s3114_s5 = sphi %s3196_s5, %s4062_s5   ;;  %s3110_s30 = sphi %s3194_s30, %s4048_s30   ;;  %s3106_s29 = sphi %s3192_s29, %s4061_s29   ;;  %s3102_s28 = sphi %s3190_s28, %s4046_s28   ;;  %s3098_s27 = sphi %s3188_s27, %s4045_s27   ;;  %s3094_s26 = sphi %s3186_s26, %s4044_s26   ;;  %s3090_s25 = sphi %s3184_s25, %s4043_s25   ;;  %s3086_s24 = sphi %s3182_s24, %s4042_s24   ;;  %s3082_s23 = sphi %s3180_s23, %s4060_s23   ;;  %s3078_s22 = sphi %s3178_s22, %s4059_s22   ;;  %s3074_s21 = sphi %s3176_s21, %s4058_s21   ;;  %s3070_s20 = sphi %s3174_s20, %s4057_s20   ;;  %s3066_s19 = sphi %s3172_s19, %s4056_s19   ;;  %s3062_s18 = sphi %s3170_s18, %s4054_s18   ;;  %s3058_s17 = sphi %s3168_s17, %s4053_s17   ;;  %s3054_s16 = sphi %s3166_s16, %s4051_s16   ;;  %s3050_s15 = sphi %s3164_s15, %s4049_s15  }
  0x18   : > { %3975 = sst [smem:[#allocation17_spill]] %s3054_s16  ;;  %s42_s9 = sadd.s32 1, %s3110_s30 }
  0x19   : > { %3976 = sst [smem:[#allocation18_spill]] %s3090_s25  ;;  %p43_p0 = scmp.ge.s32.totalorder %s42_s9, 3 }
  0x1a   : > { %3977 = sst [smem:[#allocation19_spill]] %s3094_s26  ;;  %s45_s10 = sadd.s32 1, %s3114_s5 }
  0x1b   : > { %3978 = sst [smem:[#allocation20_spill]] %s3098_s27  ;;  %s64_s11 = sadd.s32 1, %s3094_s26 }
  0x1c   : > { %3979 = sst [smem:[#allocation21_spill]] %s3102_s28  ;;  %p71_p1 = scmp.ne.s32.totalorder %s3094_s26, %s3090_s25 }
  0x1d   : > { %3980 = sst [smem:[#allocation22_spill]] %s3106_s29  ;;  %s4064_s9 = smov (%p43_p0, %s42_s9), 0 }
  0x1e   : > { %3981 = sst [smem:[#allocation23_spill]] %s3110_s30  ;;  %s4066_s10 = smov (!%p43_p0, %s45_s10), %s3114_s5 }
  0x1f   : > { %3982 = sst [smem:[#allocation24_spill]] %s3114_s5  ;;  %s3272_s12 = ssub.s32 %s3110_s30, %s4064_s9 }
  0x20   : > { %3983 = sst [smem:[#allocation25_spill]] %s3118_s6  ;;  %p3951_p2 = scmp.eq.s32.totalorder %s3122_s7, 0 }
  0x21   : > { %3984 = sst [smem:[#allocation26_spill]] %s4064_s9  ;;  %p3952_p3 = scmp.ge.s32.totalorder %s4066_s10, 2 }
  0x22   : > { %p77_p4 = scmp.ne.s32.totalorder %s3090_s25, %s3086_s24  ;;  %p3279_p5 = por %p3951_p2, %p71_p1 }
  0x23   : > { %p3950_p6 = scmp.eq.s32.totalorder %s3258_s8, 0  ;;  %p3949_p9 = scmp.lt.s32.totalorder %s3122_s7, 18 }
  0x24   : > { %s3287_s14 = scalar_select %p3952_p3, 0, %s4066_s10  }
  0x25   : > { %p3291_p7 = por %p3950_p6, %p77_p4  ;;  %s217_s2 = sand.u32 1, %s3094_s26  }
  0x26   : > { %3986 = sst [smem:[#allocation27_spill]] %s3287_s14  ;;  %s3298_s4 = ssub.s32 %s3114_s5, %s3287_s14 }
  0x27   : > { %s3987_s9 = scalar_select %p3291_p7, 1, 0 }
  0x28   : > { %s61_s24 = sor.u32 %s3272_s12, %s3298_s4  ;;  %s1986_s3 = sshll.u32 %s217_s2, 9 }
  0x29   : > { %3988 = sst [smem:[#allocation28_spill]] %s3987_s9  ;;  %p62_p10 = scmp.eq.s32.totalorder %s61_s24, 0 }
  0x2a   : > { %s1988_s28 = sshll.u32 %s3110_s30, 2  ;;  %s2490_s27 = smul.u32 384, %s3114_s5 }
  0x2b   : > { %s3305_s29 = scalar_select %p62_p10, %s3094_s26, %s64_s11  }
  0x2c   : > { %s221_s25 = scalar_lea.vmem [#allocation3], %s1986_s3  ;;  %p3315_p11 = pnand %p3949_p9, %p3279_p5 }
  0x2d   : > { %3989 = sst [smem:[#allocation29_spill]] %s3305_s29  ;;  %s233_s1 = sshll.u32 %s221_s25, 4  ;;  %s3309_s1 = int_to_ptr.vmem [resolvable:$true] %s233_s1 }
  0x2e   : > { %s228_s9 = sadd.s32 %s2490_s27, %s1988_s28  ;;  %s3991_s0 = sld [smem:[#allocation32_spill]] }
  0x2f   : > { %s1990_s24 = sshll.u32 %s228_s9, 6  ;;  %s3325_s3 = scalar_lea.sflag [#allocation4], %s217_s2 }
  0x30   : > { %p2814_p0 = pneg %p3315_p11 }
  0x34   : > { %s3322_s11 = scalar_lea.hbm %s3991_s0, %s1990_s24  ;;  %s2817_s15 = scalar_lea.hbm %s3991_s0, 49152 }
  0x35   : > { %s2812_s25 = scalar_lea.hbm %s3322_s11, 8192  ;;  %p2818_p5 = scmp.lt.u32.totalorder %s3322_s11, %s3991_s0 }
  0x36   : > { %p2813_p13 = scmp.ne.s32.totalorder %s3322_s11, %s2812_s25  ;;  %p2819_p10 = scmp.lt.u32.totalorder %s2817_s15, %s2812_s25 }
  0x37   : > { %p2821_p8 = scmp.lt.u32.totalorder %s2812_s25, %s3322_s11 }
  0x38   : > { %p2815_p1 = pnand %p2814_p0, %p2813_p13  ;;  %p2820_p9 = por %p2819_p10, %p2818_p5 }
  0x3a   : > { %p2816_p4 = pneg %p2815_p1  ;;  %p2822_p6 = por %p2821_p8, %p2820_p9 }
  0x3c   : > { %p2823_p2 = pnand %p2822_p6, %p2816_p4 }
  0x3e   : > { %2826 = shalt.err (!%p2823_p2)
}
  0x3f   : > { %s2827_s2 = scalar_lea.vmem %s3309_s1, 8192  ;;  %s3124_s13 = smov [#allocation3]  }
  0x40   : > { %p2828_p13 = scmp.ne.s32.totalorder %s3309_s1, %s2827_s2  ;;  %s2832_s24 = sshll.u32 %s3124_s13, 4  ;;  %s2833_s24 = int_to_ptr.vmem [resolvable:$false] %s2832_s24 }
  0x41   : > { %s2834_s27 = scalar_lea.vmem %s2833_s24, 16384  ;;  %p2835_p12 = scmp.lt.s32.totalorder %s3309_s1, %s2833_s24 }
  0x42   : > { %p2830_p1 = pnand %p2828_p13, %p2814_p0  ;;  %p2836_p5 = scmp.lt.s32.totalorder %s2834_s27, %s2827_s2 }
  0x44   : > { %p2831_p3 = pneg %p2830_p1  ;;  %p2837_p10 = por %p2836_p5, %p2835_p12 }
  0x46   : > { %p2838_p8 = pnand %p2837_p10, %p2831_p3 }
  0x48   : > { %2841 = shalt.err (!%p2838_p8)
}
  0x49   : > { %s3125_s25 = smov 768   ;;  %s3126_s28 = smov 256  }
  0x4a   : > { %s3127_s15 = smov 16   ;;  %p266_p2 = scmp.lt.s32.totalorder %s3122_s7, 19 }
  0x4b   : > { %2506 = dma.hbm_to_vmem [thread:$0]  (!%p3315_p11), %s3322_s11, 8192, %s3309_s1, %s3325_s3, %s3125_s25, %s3126_s28, %s3127_s15  }
  0x4c   : > { %p3992_p3 = scmp.ge.s32.totalorder %s3122_s7, 1  ;;  %s3953_s9 = sadd.s32 4294967294, %s3122_s7  }
  0x4d   : > { %s49_s2 = sadd.s32 1, %s3118_s6  ;;  %p3994_p9 = scmp.ge.s32.totalorder %s4066_s10, 2 }
  0x4e   : > { %p3356_p6 = pnand %p3992_p3, %p266_p2  ;;  %s94_s13 = sadd.s32 1, %s3082_s23 }
  0x4f   : > { %s4068_s2 = smov (!%p3994_p9, %s49_s2), %s3118_s6  ;;  %p101_p12 = scmp.ne.s32.totalorder %s3082_s23, %s3078_s22 }
  0x50   : > { %p51_p11 = scmp.ge.s32.totalorder %s4068_s2, 3  ;;  %p107_p0 = scmp.ne.s32.totalorder %s3078_s22, %s3074_s21 }
  0x51   : > { %p3995_p4 = scmp.eq.s32.totalorder %s3122_s7, 0  ;;  %s124_s14 = sadd.s32 1, %s3070_s20 }
  0x52   : > { %s4070_s2 = smov (%p51_p11, %s4068_s2), 0  ;;  %p3998_p1 = scmp.eq.s32.totalorder %s3258_s8, 0 }
  0x53   : > { %p3372_p13 = por %p101_p12, %p3995_p4  ;;  %3997 = sst [smem:[#allocation30_spill]] %s4070_s2 }
  0x54   : > { %s3999_s10 = sld [smem:[#allocation17_spill]]  ;;  %p3381_p5 = por %p107_p0, %p3998_p1 }
  0x55   : > { %p134_p10 = scmp.ne.s32.totalorder %s3070_s20, %s3066_s19  ;;  %s90_s21 = ssub.s32 %s3118_s6, %s4070_s2 }
  0x56   : > { %s4000_s11 = scalar_select %p3381_p5, 1, 0 }
  0x57   : > { %s4001_s3 = sld [smem:[#allocation16_spill]]  ;;  %p140_p8 = scmp.ne.s32.totalorder %s3066_s19, %s3062_s18 }
  0x58   : > { %s91_s24 = sor.u32 %s90_s21, %s3272_s12  ;;  %s121_s27 = sor.u32 %s90_s21, %s3298_s4 }
  0x59   : > { %p92_p2 = scmp.eq.s32.totalorder %s91_s24, 0  ;;  %p122_p3 = scmp.eq.s32.totalorder %s121_s27, 0 }
  0x5a   : > { %p4002_p9 = scmp.eq.s32.totalorder %s3258_s8, 17  ;;  %p141_p11 = scmp.eq.s32.totalorder %s3953_s9, 17 }
  0x5b   : > { %s3402_s28 = scalar_select %p92_p2, %s3082_s23, %s94_s13  }
  0x5c   : > { %p3395_p12 = por %p4002_p9, %p134_p10  ;;  %p3407_p0 = por %p141_p11, %p140_p8 }
  0x5d   : > { %4004 = sst [smem:[#allocation31_spill]] %s3402_s28  ;;  %p150_p4 = scmp.eq.s32.totalorder %s90_s21, 0 }
  0x5e   : > { %s4003_s25 = scalar_select %p3395_p12, 1, 0 }
  0x5f   : > { %s3405_s15 = scalar_select %p122_p3, %s3070_s20, %s124_s14  }
  0x60   : > { %s4005_s0 = scalar_select %p3407_p0, 1, 0 }
  0x61   : > { %s152_s4 = sadd.s32 1, %s3058_s17  ;;  %p162_p1 = scmp.ne.s32.totalorder %s3058_s17, %s3999_s10 }
  0x62   : > { %4006 = sst [smem:[#allocation16_spill]] %s4005_s0  ;;  %p4007_p10 = pmov %p4002_p9 }
  0x63   : > { %s3415_s12 = scalar_select %p150_p4, %s3058_s17, %s152_s4  }
  0x64   : > { %p3419_p9 = por %p162_p1, %p4007_p10  ;;  %p168_p2 = scmp.ne.s32.totalorder %s3999_s10, %s4001_s3 }
  0x65   : > { %s243_s13 = sand.u32 1, %s3082_s23   ;;  %s2491_s14 = smul.u32 192, %s3110_s30 }
  0x66   : > { %s4008_s24 = scalar_select %p3419_p9, 1, 0 }
  0x67   : > { %p3427_p3 = por %p168_p2, %p141_p11  ;;  %s1991_s9 = sshll.u32 %s243_s13, 8 }
  0x68   : > { %s253_s21 = sadd.s32 %s3118_s6, %s2491_s14  ;;  %s4010_s26 = sld [smem:[#allocation33_spill]] }
  0x69   : > { %s4009_s27 = scalar_select %p3427_p3, 1, 0 }
  0x6a   : > { %s1994_s2 = sshll.u32 %s253_s21, 6  ;;  %s247_s28 = scalar_lea.vmem [#allocation6], %s1991_s9 }
  0x6b   : > { %s258_s10 = sshll.u32 %s247_s28, 4  ;;  %p4012_p8 = scmp.lt.s32.totalorder %s3122_s7, 18  ;;  %s3437_s10 = int_to_ptr.vmem [resolvable:$true] %s258_s10 }
  0x6c   : > { %s3447_s14 = scalar_lea.sflag [#allocation7], %s243_s13 }
  0x6d   : > { %p3443_p11 = pnand %p4012_p8, %p3372_p13 }
  0x6e   : > { %s4011_s0 = smov %s4010_s26  ;;  %s3435_s4 = scalar_lea.hbm %s4010_s26, %s1994_s2 }
  0x6f   : > { %s2842_s26 = scalar_lea.hbm %s3435_s4, 4096  ;;  %p2844_p1 = pneg %p3443_p11 }
  0x70   : > { %p2843_p4 = scmp.ne.s32.totalorder %s3435_s4, %s2842_s26  ;;  %s2847_s9 = scalar_lea.hbm %s4011_s0, 36864 }
  0x71   : > { %p2848_p13 = scmp.lt.u32.totalorder %s3435_s4, %s4011_s0  ;;  %p2849_p8 = scmp.lt.u32.totalorder %s2847_s9, %s2842_s26 }
  0x72   : > { %p2845_p10 = pnand %p2844_p1, %p2843_p4  ;;  %p2851_p0 = scmp.lt.u32.totalorder %s2842_s26, %s3435_s4 }
  0x73   : > { %p2850_p3 = por %p2849_p8, %p2848_p13 }
  0x74   : > { %p2846_p2 = pneg %p2845_p10 }
  0x75   : > { %p2852_p12 = por %p2851_p0, %p2850_p3 }
  0x77   : > { %p2853_p9 = pnand %p2852_p12, %p2846_p2 }
  0x79   : > { %2856 = shalt.err (!%p2853_p9)
}
  0x7a   : > { %s2857_s28 = scalar_lea.vmem %s3437_s10, 4096  ;;  %s3128_s13 = smov [#allocation6]  }
  0x7b   : > { %p2858_p4 = scmp.ne.s32.totalorder %s3437_s10, %s2857_s28  ;;  %s2862_s21 = sshll.u32 %s3128_s13, 4  ;;  %s2863_s21 = int_to_ptr.vmem [resolvable:$false] %s2862_s21 }
  0x7c   : > { %s2864_s29 = scalar_lea.vmem %s2863_s21, 8192  ;;  %p2865_p7 = scmp.lt.s32.totalorder %s3437_s10, %s2863_s21 }
  0x7d   : > { %p2860_p10 = pnand %p2858_p4, %p2844_p1  ;;  %p2866_p13 = scmp.lt.s32.totalorder %s2864_s29, %s2857_s28 }
  0x7f   : > { %p2861_p5 = pneg %p2860_p10  ;;  %p2867_p8 = por %p2866_p13, %p2865_p7 }
  0x81   : > { %p2868_p0 = pnand %p2867_p8, %p2861_p5 }
  0x83   : > { %2871 = shalt.err (!%p2868_p0)
}
  0x84   : > { %s3129_s26 = smov 192   ;;  %s3130_s5 = smov 64  }
  0x85   : > { %s3131_s9 = smov 4   ;;  %270 = sbr.rel (%p3356_p6) target bundleno = 711 (0x2c7), region = 28 }
  0x86   : > { %2509 = dma.hbm_to_vmem [thread:$0]  (!%p3443_p11), %s3435_s4, 4096, %s3437_s10, %s3447_s14, %s3129_s26, %s3130_s5, %s3131_s9  }
  0x87   : > { %s4014_s2 = sld [smem:[#allocation18_spill]] (!%p3356_p6)  ;;  %s4015_s1 = sld [smem:[#allocation28_spill]] (!%p3356_p6) }
  0x8d   : > { %s272_s13 = sand.u32 1, %s4014_s2   ;;  %p4016_p7 = scmp.ne.s32.totalorder %s4015_s1, 0 }
  0x8e   : > { %s1996_s21 = sshll.u32 %s272_s13, 9  ;;  %s273_s28 = scalar_lea.sflag [#allocation4], %s272_s13 }
  0x8f   : > { %s3478_s29 = scalar_lea.vmem [#allocation3], %s1996_s21 }
  0x90   : > { %3033 = dma.done.wait (%p4016_p7), %s273_s28, 8192  }
  0x91   : > { %3035 = vsyncadd (%p4016_p7), %s273_s28, 4294959104  ;;  %s281_s0 = sand.u32 1, %s3078_s22   ;;  %p4017_p6 = scmp.ne.s32.totalorder %s4000_s11, 0 }
  0x92   : > { %s1997_s3 = sshll.u32 %s281_s0, 8  ;;  %s282_s4 = scalar_lea.sflag [#allocation7], %s281_s0 }
  0x93   : > { %s3485_s10 = scalar_lea.vmem [#allocation6], %s1997_s3 }
  0x94   : > { %3037 = dma.done.wait (%p4017_p6), %s282_s4, 4096  }
  0x95   : > { %3039 = vsyncadd (%p4017_p6), %s282_s4, 4294963200  ;;  %s4018_s16 = sld [smem:[#allocation17_spill]]  ;;  %s3963_s14 = sand.u32 1, %s3066_s19  }
  0x96   : > { %s1998_s5 = sshll.u32 %s3963_s14, 7  ;;  %s4019_s0 = sld [smem:[#allocation20_spill]] }
  0x97   : > { %s3495_s9 = scalar_lea.vmem [#allocation8], %s1998_s5 }
  0x9b   : > { %s315_s26 = sand.u32 1, %s4018_s16  }
  0x9c   : > { %s3497_s2 = scalar_lea.vmem [#allocation9], %s315_s26  ;;  %s3499_s1 = scalar_lea.vmem [#allocation11], %s315_s26 }
  0x9d   : > { %p1999_p5 = scmp.ne.s32.totalorder %s4019_s0, 0 }
  0x9e   : > { %v3132_v0 = vmov (!%p1999_p5), 0.0  }
  0x9f   : > { %331 = sbr.rel (%p1999_p5) target bundleno = 175 (0xaf), region = 40  ;;  %332 = vst [vmem:[#allocation2] sm:$0xff] (!%p1999_p5), %v3132_v0  ;;  %333 = vst [vmem:[#allocation2 + $0x8] sm:$0xff] (!%p1999_p5), %v3132_v0 }
  0xa0   : > { %334 = vst [vmem:[#allocation2 + $0x10] sm:$0xff] (!%p1999_p5), %v3132_v0  ;;  %335 = vst [vmem:[#allocation2 + $0x18] sm:$0xff] (!%p1999_p5), %v3132_v0 }
  0xa1   : > { %336 = vst [vmem:[#allocation2 + $0x20] sm:$0xff] (!%p1999_p5), %v3132_v0  ;;  %337 = vst [vmem:[#allocation2 + $0x28] sm:$0xff] (!%p1999_p5), %v3132_v0 }
  0xa2   : > { %338 = vst [vmem:[#allocation2 + $0x30] sm:$0xff] (!%p1999_p5), %v3132_v0  ;;  %339 = vst [vmem:[#allocation2 + $0x38] sm:$0xff] (!%p1999_p5), %v3132_v0 }
  0xa3   : > { %340 = vst [vmem:[#allocation2 + $0x40] sm:$0xff] (!%p1999_p5), %v3132_v0  ;;  %341 = vst [vmem:[#allocation2 + $0x48] sm:$0xff] (!%p1999_p5), %v3132_v0 }
  0xa4   : > { %342 = vst [vmem:[#allocation2 + $0x50] sm:$0xff] (!%p1999_p5), %v3132_v0  ;;  %343 = vst [vmem:[#allocation2 + $0x58] sm:$0xff] (!%p1999_p5), %v3132_v0 }
  0xa5   : > { %344 = vst [vmem:[#allocation2 + $0x60] sm:$0xff] (!%p1999_p5), %v3132_v0  ;;  %345 = vst [vmem:[#allocation2 + $0x68] sm:$0xff] (!%p1999_p5), %v3132_v0 }
  0xa6   : > { %346 = vst [vmem:[#allocation2 + $0x70] sm:$0xff] %v3132_v0  ;;  %347 = vst [vmem:[#allocation2 + $0x78] sm:$0xff] %v3132_v0 }
  0xa7   : > { %348 = vst [vmem:[#allocation2 + $0x80] sm:$0xff] %v3132_v0  ;;  %349 = vst [vmem:[#allocation2 + $0x88] sm:$0xff] %v3132_v0 }
  0xa8   : > { %350 = vst [vmem:[#allocation2 + $0x90] sm:$0xff] %v3132_v0  ;;  %351 = vst [vmem:[#allocation2 + $0x98] sm:$0xff] %v3132_v0 }
  0xa9   : > { %352 = vst [vmem:[#allocation2 + $0xa0] sm:$0xff] %v3132_v0  ;;  %353 = vst [vmem:[#allocation2 + $0xa8] sm:$0xff] %v3132_v0 }
  0xaa   : > { %354 = vst [vmem:[#allocation2 + $0xb0] sm:$0xff] %v3132_v0  ;;  %355 = vst [vmem:[#allocation2 + $0xb8] sm:$0xff] %v3132_v0 }
  0xab   : > { %356 = vst [vmem:[#allocation2 + $0xc0] sm:$0xff] %v3132_v0  ;;  %357 = vst [vmem:[#allocation2 + $0xc8] sm:$0xff] %v3132_v0 }
  0xac   : > { %358 = vst [vmem:[#allocation2 + $0xd0] sm:$0xff] %v3132_v0  ;;  %359 = vst [vmem:[#allocation2 + $0xd8] sm:$0xff] %v3132_v0 }
  0xad   : > { %360 = vst [vmem:[#allocation2 + $0xe0] sm:$0xff] %v3132_v0  ;;  %361 = vst [vmem:[#allocation2 + $0xe8] sm:$0xff] %v3132_v0 }
  0xae   : > { %362 = vst [vmem:[#allocation2 + $0xf0] sm:$0xff] %v3132_v0  ;;  %363 = vst [vmem:[#allocation2 + $0xf8] sm:$0xff] %v3132_v0 }
  0xaf PF: > { %v2684_v1 = vld [vmem:[%s3485_s10 + $0x40] sm:$0xff]   ;;  %v2688_v5 = vld [vmem:[%s3485_s10 + $0x48] sm:$0xff]   ;;  %v2692_v9 = vld [vmem:[%s3485_s10 + $0x50] sm:$0xff]   ;;  %s4020_s11 = sld [smem:[#allocation20_spill]] }
  0xb0   : > { %v2685_v2 = vld [vmem:[%s3485_s10 + $0xc0] sm:$0xff]   ;;  %2266 = vmatprep.subr.bf16.mxu0 %v2684_v1  ;;  %v2689_v6 = vld [vmem:[%s3485_s10 + $0xc8] sm:$0xff]   ;;  %v2693_v10 = vld [vmem:[%s3485_s10 + $0xd0] sm:$0xff]  }
  0xb1   : > { %v2686_v3 = vld [vmem:[%s3485_s10] sm:$0xff]   ;;  %2378 = vmatprep.subr.bf16.mxu1 %v2685_v2  ;;  %v2690_v7 = vld [vmem:[%s3485_s10 + $0x8] sm:$0xff]   ;;  %v2694_v11 = vld [vmem:[%s3485_s10 + $0x10] sm:$0xff]  }
  0xb2   : > { %v2687_v4 = vld [vmem:[%s3485_s10 + $0x80] sm:$0xff]   ;;  %2267 = vmatpush3.bf16.msra.mxu0 %v2686_v3  ;;  %v2691_v8 = vld [vmem:[%s3485_s10 + $0x88] sm:$0xff]   ;;  %v2695_v12 = vld [vmem:[%s3485_s10 + $0x90] sm:$0xff]  }
  0xb3   : > { %2379 = vmatpush3.bf16.msra.mxu1 %v2687_v4  ;;  %2268 = vmatprep.subr.bf16.mxu0 %v2688_v5  ;;  %v2696_v13 = vld [vmem:[%s3485_s10 + $0x58] sm:$0xff]   ;;  %v2700_v17 = vld [vmem:[%s3485_s10 + $0x60] sm:$0xff]   ;;  %v2704_v21 = vld [vmem:[%s3485_s10 + $0x68] sm:$0xff]  }
  0xb4   : > { %2380 = vmatprep.subr.bf16.mxu1 %v2689_v6  ;;  %v2697_v14 = vld [vmem:[%s3485_s10 + $0xd8] sm:$0xff]   ;;  %v2701_v18 = vld [vmem:[%s3485_s10 + $0xe0] sm:$0xff]   ;;  %v2705_v22 = vld [vmem:[%s3485_s10 + $0xe8] sm:$0xff]  }
  0xb5   : > { %v2698_v15 = vld [vmem:[%s3485_s10 + $0x18] sm:$0xff]   ;;  %v2702_v19 = vld [vmem:[%s3485_s10 + $0x20] sm:$0xff]   ;;  %v2706_v23 = vld [vmem:[%s3485_s10 + $0x28] sm:$0xff]   ;;  %p2096_p12 = scmp.ne.s32.totalorder %s4020_s11, 2 }
  0xb6   : > { %2269 = vmatpush3.bf16.msra.mxu0 %v2690_v7  ;;  %v2699_v16 = vld [vmem:[%s3485_s10 + $0x98] sm:$0xff]   ;;  %v2703_v20 = vld [vmem:[%s3485_s10 + $0xa0] sm:$0xff]   ;;  %v2707_v24 = vld [vmem:[%s3485_s10 + $0xa8] sm:$0xff]   ;;  %s4021_s13 = sld [smem:[#allocation21_spill]] (!%p2096_p12) }
  0xb7   : > { %2381 = vmatpush3.bf16.msra.mxu1 %v2691_v8  ;;  %2270 = vmatprep.subr.bf16.mxu0 %v2692_v9  ;;  %v2708_v25 = vld [vmem:[%s3485_s10 + $0x70] sm:$0xff]   ;;  %v2712_v29 = vld [vmem:[%s3485_s10 + $0x78] sm:$0xff]  }
  0xb8   : > { %2382 = vmatprep.subr.bf16.mxu1 %v2693_v10  ;;  %v2709_v26 = vld [vmem:[%s3485_s10 + $0xf0] sm:$0xff]   ;;  %v2713_v30 = vld [vmem:[%s3485_s10 + $0xf8] sm:$0xff]  }
  0xb9   : > { %v2710_v27 = vld [vmem:[%s3485_s10 + $0x30] sm:$0xff]   ;;  %v2714_v31 = vld [vmem:[%s3485_s10 + $0x38] sm:$0xff]  }
  0xba   : > { %2271 = vmatpush3.bf16.msra.mxu0 %v2694_v11  ;;  %v2711_v28 = vld [vmem:[%s3485_s10 + $0xb0] sm:$0xff]   ;;  %v2715_v32 = vld [vmem:[%s3485_s10 + $0xb8] sm:$0xff]  }
  0xbb   : > { %2383 = vmatpush3.bf16.msra.mxu1 %v2695_v12  ;;  %2272 = vmatprep.subr.bf16.mxu0 %v2696_v13  ;;  %v2716_v33 = vld [vmem:[%s3478_s29] ss:$16 sps:$4 sm:$0xff]   ;;  %v2718_v34 = vld [vmem:[%s3478_s29 + $0x4] ss:$16 sps:$4 sm:$0xff]   ;;  %v2719_v35 = vld [vmem:[%s3478_s29 + $0x8] ss:$16 sps:$4 sm:$0xff]  }
  0xbc   : > { %2384 = vmatprep.subr.bf16.mxu1 %v2697_v14  ;;  %v2721_v36 = vld [vmem:[%s3478_s29 + $0xc] ss:$16 sps:$4 sm:$0xff]   ;;  %1068 = vmatprep.mubr.bf16.mxu0 %v2718_v34  ;;  %v2722_v37 = vld [vmem:[%s3478_s29 + $0x24] ss:$16 sps:$4 sm:$0xff]   ;;  %v2726_v39 = vld [vmem:[%s3478_s29 + $0x20] ss:$16 sps:$4 sm:$0xff]  }
  0xbd   : > { %1229 = vmatprep.mubr.bf16.mxu1 %v2721_v36  ;;  %v2724_v38 = vld [vmem:[%s3478_s29 + $0x2c] ss:$16 sps:$4 sm:$0xff]   ;;  %v2727_v40 = vld [vmem:[%s3478_s29 + $0x28] ss:$16 sps:$4 sm:$0xff]   ;;  %v2728_v41 = vld [vmem:[%s3478_s29 + $0x44] ss:$16 sps:$4 sm:$0xff]  }
  0xbe   : > { %2273 = vmatpush3.bf16.msra.mxu0 %v2698_v15  ;;  %v2730_v42 = vld [vmem:[%s3478_s29 + $0x4c] ss:$16 sps:$4 sm:$0xff]   ;;  %v2732_v43 = vld [vmem:[%s3478_s29 + $0x40] ss:$16 sps:$4 sm:$0xff]   ;;  %v2733_v44 = vld [vmem:[%s3478_s29 + $0x48] ss:$16 sps:$4 sm:$0xff]  }
  0xbf   : > { %2385 = vmatpush3.bf16.msra.mxu1 %v2699_v16  ;;  %2274 = vmatprep.subr.bf16.mxu0 %v2700_v17  ;;  %v2734_v45 = vld [vmem:[%s3478_s29 + $0x64] ss:$16 sps:$4 sm:$0xff]   ;;  %v2736_v46 = vld [vmem:[%s3478_s29 + $0x6c] ss:$16 sps:$4 sm:$0xff]   ;;  %v2738_v47 = vld [vmem:[%s3478_s29 + $0x60] ss:$16 sps:$4 sm:$0xff]  }
  0xc0   : > { %2386 = vmatprep.subr.bf16.mxu1 %v2701_v18  ;;  %v2739_v48 = vld [vmem:[%s3478_s29 + $0x68] ss:$16 sps:$4 sm:$0xff]   ;;  %v2740_v49 = vld [vmem:[%s3478_s29 + $0x84] ss:$16 sps:$4 sm:$0xff]   ;;  %v2742_v50 = vld [vmem:[%s3478_s29 + $0x8c] ss:$16 sps:$4 sm:$0xff]  }
  0xc1   : > { %v2744_v51 = vld [vmem:[%s3478_s29 + $0x80] ss:$16 sps:$4 sm:$0xff]   ;;  %v2745_v52 = vld [vmem:[%s3478_s29 + $0x88] ss:$16 sps:$4 sm:$0xff]   ;;  %v2746_v53 = vld [vmem:[%s3478_s29 + $0xa4] ss:$16 sps:$4 sm:$0xff]  }
  0xc2   : > { %2275 = vmatpush3.bf16.msra.mxu0 %v2702_v19  ;;  %v2748_v54 = vld [vmem:[%s3478_s29 + $0xac] ss:$16 sps:$4 sm:$0xff]   ;;  %v2750_v55 = vld [vmem:[%s3478_s29 + $0xa0] ss:$16 sps:$4 sm:$0xff]   ;;  %v2751_v56 = vld [vmem:[%s3478_s29 + $0xa8] ss:$16 sps:$4 sm:$0xff]  }
  0xc3   : > { %2387 = vmatpush3.bf16.msra.mxu1 %v2703_v20  ;;  %2276 = vmatprep.subr.bf16.mxu0 %v2704_v21  ;;  %v2752_v57 = vld [vmem:[%s3478_s29 + $0xc4] ss:$16 sps:$4 sm:$0xff]   ;;  %v2754_v58 = vld [vmem:[%s3478_s29 + $0xcc] ss:$16 sps:$4 sm:$0xff]   ;;  %v2756_v59 = vld [vmem:[%s3478_s29 + $0xc0] ss:$16 sps:$4 sm:$0xff]  }
  0xc4   : > { %2388 = vmatprep.subr.bf16.mxu1 %v2705_v22  ;;  %v2757_v60 = vld [vmem:[%s3478_s29 + $0xc8] ss:$16 sps:$4 sm:$0xff]   ;;  %v2758_v61 = vld [vmem:[%s3478_s29 + $0xe4] ss:$16 sps:$4 sm:$0xff]   ;;  %v2760_v62 = vld [vmem:[%s3478_s29 + $0xec] ss:$16 sps:$4 sm:$0xff]  }
  0xc5   : > { %v2762_v63 = vld [vmem:[%s3478_s29 + $0xe0] ss:$16 sps:$4 sm:$0xff]   ;;  %v2763_v0 = vld [vmem:[%s3478_s29 + $0xe8] ss:$16 sps:$4 sm:$0xff]   ;;  %v2764_v1 = vld [vmem:[%s3478_s29 + $0x104] ss:$16 sps:$4 sm:$0xff]  }
  0xc6   : > { %2277 = vmatpush3.bf16.msra.mxu0 %v2706_v23  ;;  %v2766_v2 = vld [vmem:[%s3478_s29 + $0x10c] ss:$16 sps:$4 sm:$0xff]   ;;  %v2768_v3 = vld [vmem:[%s3478_s29 + $0x100] ss:$16 sps:$4 sm:$0xff]   ;;  %v2769_v4 = vld [vmem:[%s3478_s29 + $0x108] ss:$16 sps:$4 sm:$0xff]  }
  0xc7   : > { %2389 = vmatpush3.bf16.msra.mxu1 %v2707_v24  ;;  %2278 = vmatprep.subr.bf16.mxu0 %v2708_v25  ;;  %v2770_v5 = vld [vmem:[%s3478_s29 + $0x124] ss:$16 sps:$4 sm:$0xff]   ;;  %v2772_v6 = vld [vmem:[%s3478_s29 + $0x12c] ss:$16 sps:$4 sm:$0xff]   ;;  %v2774_v7 = vld [vmem:[%s3478_s29 + $0x120] ss:$16 sps:$4 sm:$0xff]  }
  0xc8   : > { %2390 = vmatprep.subr.bf16.mxu1 %v2709_v26  ;;  %v2775_v8 = vld [vmem:[%s3478_s29 + $0x128] ss:$16 sps:$4 sm:$0xff]   ;;  %v2776_v9 = vld [vmem:[%s3478_s29 + $0x144] ss:$16 sps:$4 sm:$0xff]   ;;  %v2778_v10 = vld [vmem:[%s3478_s29 + $0x14c] ss:$16 sps:$4 sm:$0xff]  }
  0xc9   : > { %v2780_v11 = vld [vmem:[%s3478_s29 + $0x140] ss:$16 sps:$4 sm:$0xff]   ;;  %v2781_v12 = vld [vmem:[%s3478_s29 + $0x148] ss:$16 sps:$4 sm:$0xff]   ;;  %v2782_v13 = vld [vmem:[%s3478_s29 + $0x164] ss:$16 sps:$4 sm:$0xff]  }
  0xca   : > { %2279 = vmatpush3.bf16.msra.mxu0 %v2710_v27  ;;  %v2784_v14 = vld [vmem:[%s3478_s29 + $0x16c] ss:$16 sps:$4 sm:$0xff]   ;;  %v2786_v15 = vld [vmem:[%s3478_s29 + $0x160] ss:$16 sps:$4 sm:$0xff]   ;;  %v2787_v16 = vld [vmem:[%s3478_s29 + $0x168] ss:$16 sps:$4 sm:$0xff]  }
  0xcb   : > { %2391 = vmatpush3.bf16.msra.mxu1 %v2711_v28  ;;  %2280 = vmatprep.subr.bf16.mxu0 %v2712_v29  ;;  %v2788_v17 = vld [vmem:[%s3478_s29 + $0x184] ss:$16 sps:$4 sm:$0xff]   ;;  %v2790_v18 = vld [vmem:[%s3478_s29 + $0x18c] ss:$16 sps:$4 sm:$0xff]   ;;  %v2792_v19 = vld [vmem:[%s3478_s29 + $0x180] ss:$16 sps:$4 sm:$0xff]  }
  0xcc   : > { %2392 = vmatprep.subr.bf16.mxu1 %v2713_v30  ;;  %v2793_v20 = vld [vmem:[%s3478_s29 + $0x188] ss:$16 sps:$4 sm:$0xff]   ;;  %v2794_v21 = vld [vmem:[%s3478_s29 + $0x1a4] ss:$16 sps:$4 sm:$0xff]   ;;  %v2796_v22 = vld [vmem:[%s3478_s29 + $0x1ac] ss:$16 sps:$4 sm:$0xff]  }
  0xcd   : > { %v2798_v23 = vld [vmem:[%s3478_s29 + $0x1a0] ss:$16 sps:$4 sm:$0xff]   ;;  %v2799_v24 = vld [vmem:[%s3478_s29 + $0x1a8] ss:$16 sps:$4 sm:$0xff]   ;;  %v2800_v25 = vld [vmem:[%s3478_s29 + $0x1c4] ss:$16 sps:$4 sm:$0xff]  }
  0xce   : > { %2281 = vmatpush3.bf16.msra.mxu0 %v2714_v31  ;;  %v2802_v26 = vld [vmem:[%s3478_s29 + $0x1cc] ss:$16 sps:$4 sm:$0xff]   ;;  %v2804_v27 = vld [vmem:[%s3478_s29 + $0x1c0] ss:$16 sps:$4 sm:$0xff]   ;;  %v2805_v28 = vld [vmem:[%s3478_s29 + $0x1c8] ss:$16 sps:$4 sm:$0xff]  }
  0xcf   : > { %2393 = vmatpush3.bf16.msra.mxu1 %v2715_v32  ;;  %v2806_v29 = vld [vmem:[%s3478_s29 + $0x1e4] ss:$16 sps:$4 sm:$0xff]   ;;  %v2808_v30 = vld [vmem:[%s3478_s29 + $0x1ec] ss:$16 sps:$4 sm:$0xff]   ;;  %v2810_v31 = vld [vmem:[%s3478_s29 + $0x1e0] ss:$16 sps:$4 sm:$0xff]  }
  0xd0   : > { %v2811_v32 = vld [vmem:[%s3478_s29 + $0x1e8] ss:$16 sps:$4 sm:$0xff]   ;;  %p2129_p9 = scmp.ne.s32.totalorder (!%p2096_p12), %s4021_s13, 0 }
  0xd1   : > { %1069 = vmatmul.mubr.bf16.vlgmr.msra.gmra.mrb[0].mxu0 %v2716_v33 }
  0xd2   : > { %1230 = vmatmul.mubr.bf16.vlgmr.msra.gmra.mrb[0].mxu1 %v2719_v35  ;;  %1076 = vmatprep.mubr.bf16.mxu0 %v2722_v37 }
  0xd3   : > { %1237 = vmatprep.mubr.bf16.mxu1 %v2724_v38 }
  0xd9   : > { %1077 = vmatmul.mubr.bf16.gmra.mrb[4].mxu0 %v2726_v39 }
  0xda   : > { %1238 = vmatmul.mubr.bf16.gmra.mrb[4].mxu1 %v2727_v40  ;;  %1084 = vmatprep.mubr.bf16.mxu0 %v2728_v41 }
  0xdb   : > { %1245 = vmatprep.mubr.bf16.mxu1 %v2730_v42  ;;  %v364_v42 = vld [vmem:[#allocation2] sm:$0xff] }
  0xe1   : > { %1085 = vmatmul.mubr.bf16.gmra.mrb[8].mxu0 %v2732_v43 }
  0xe2   : > { %1246 = vmatmul.mubr.bf16.gmra.mrb[8].mxu1 %v2733_v44  ;;  %1092 = vmatprep.mubr.bf16.mxu0 %v2734_v45 }
  0xe3   : > { %1253 = vmatprep.mubr.bf16.mxu1 %v2736_v46 }
  0xe9   : > { %1093 = vmatmul.mubr.bf16.gmra.mrb[12].mxu0 %v2738_v47  ;;  %v365_v47 = vld [vmem:[#allocation2 + $0x8] sm:$0xff] }
  0xea   : > { %1254 = vmatmul.mubr.bf16.gmra.mrb[12].mxu1 %v2739_v48  ;;  %1100 = vmatprep.mubr.bf16.mxu0 %v2740_v49 }
  0xeb   : > { %1261 = vmatprep.mubr.bf16.mxu1 %v2742_v50 }
  0xf1   : > { %1101 = vmatmul.mubr.bf16.gmra.mrb[16].mxu0 %v2744_v51 }
  0xf2   : > { %1262 = vmatmul.mubr.bf16.gmra.mrb[16].mxu1 %v2745_v52  ;;  %1108 = vmatprep.mubr.bf16.mxu0 %v2746_v53 }
  0xf3   : > { %1269 = vmatprep.mubr.bf16.mxu1 %v2748_v54 }
  0xf9   : > { %1109 = vmatmul.mubr.bf16.gmra.mrb[20].mxu0 %v2750_v55 }
  0xfa   : > { %1270 = vmatmul.mubr.bf16.gmra.mrb[20].mxu1 %v2751_v56  ;;  %1116 = vmatprep.mubr.bf16.mxu0 %v2752_v57 }
  0xfb   : > { %1277 = vmatprep.mubr.bf16.mxu1 %v2754_v58 }
 0x101   : > { %1117 = vmatmul.mubr.bf16.gmra.mrb[24].mxu0 %v2756_v59 }
 0x102   : > { %1278 = vmatmul.mubr.bf16.gmra.mrb[24].mxu1 %v2757_v60  ;;  %1124 = vmatprep.mubr.bf16.mxu0 %v2758_v61  ;;  %v366_v60 = vld [vmem:[#allocation2 + $0x10] sm:$0xff] }
 0x103   : > { %1285 = vmatprep.mubr.bf16.mxu1 %v2760_v62 }
 0x109   : > { %1125 = vmatmul.mubr.bf16.gmra.mrb[28].mxu0 %v2762_v63 }
 0x10a   : > { %1286 = vmatmul.mubr.bf16.gmra.mrb[28].mxu1 %v2763_v0  ;;  %1132 = vmatprep.mubr.bf16.mxu0 %v2764_v1  ;;  %v367_v1 = vld [vmem:[#allocation2 + $0x18] sm:$0xff] }
 0x10b   : > { %1293 = vmatprep.mubr.bf16.mxu1 %v2766_v2 }
 0x111   : > { %1133 = vmatmul.mubr.bf16.gmra.mrb[32].mxu0 %v2768_v3 }
 0x112   : > { %1294 = vmatmul.mubr.bf16.gmra.mrb[32].mxu1 %v2769_v4  ;;  %1140 = vmatprep.mubr.bf16.mxu0 %v2770_v5 }
 0x113   : > { %1301 = vmatprep.mubr.bf16.mxu1 %v2772_v6 }
 0x119   : > { %1141 = vmatmul.mubr.bf16.gmra.mrb[36].mxu0 %v2774_v7 }
 0x11a   : > { %1302 = vmatmul.mubr.bf16.gmra.mrb[36].mxu1 %v2775_v8  ;;  %1148 = vmatprep.mubr.bf16.mxu0 %v2776_v9 }
 0x11b   : > { %1309 = vmatprep.mubr.bf16.mxu1 %v2778_v10 }
 0x121   : > { %1149 = vmatmul.mubr.bf16.gmra.mrb[40].mxu0 %v2780_v11 }
 0x122   : > { %1310 = vmatmul.mubr.bf16.gmra.mrb[40].mxu1 %v2781_v12  ;;  %1156 = vmatprep.mubr.bf16.mxu0 %v2782_v13 }
 0x123   : > { %1317 = vmatprep.mubr.bf16.mxu1 %v2784_v14  ;;  %v368_v14 = vld [vmem:[#allocation2 + $0x20] sm:$0xff] }
 0x129   : > { %1157 = vmatmul.mubr.bf16.gmra.mrb[44].mxu0 %v2786_v15 }
 0x12a   : > { %1318 = vmatmul.mubr.bf16.gmra.mrb[44].mxu1 %v2787_v16  ;;  %1164 = vmatprep.mubr.bf16.mxu0 %v2788_v17 }
 0x12b   : > { %1325 = vmatprep.mubr.bf16.mxu1 %v2790_v18 }
 0x131   : > { %1165 = vmatmul.mubr.bf16.gmra.mrb[48].mxu0 %v2792_v19  ;;  %v369_v19 = vld [vmem:[#allocation2 + $0x28] sm:$0xff] }
 0x132   : > { %1326 = vmatmul.mubr.bf16.gmra.mrb[48].mxu1 %v2793_v20  ;;  %1172 = vmatprep.mubr.bf16.mxu0 %v2794_v21 }
 0x133   : > { %1333 = vmatprep.mubr.bf16.mxu1 %v2796_v22 }
 0x139   : > { %1173 = vmatmul.mubr.bf16.gmra.mrb[52].mxu0 %v2798_v23 }
 0x13a   : > { %1334 = vmatmul.mubr.bf16.gmra.mrb[52].mxu1 %v2799_v24  ;;  %1180 = vmatprep.mubr.bf16.mxu0 %v2800_v25 }
 0x13b   : > { %1341 = vmatprep.mubr.bf16.mxu1 %v2802_v26 }
 0x141   : > { %1181 = vmatmul.mubr.bf16.gmra.mrb[56].mxu0 %v2804_v27 }
 0x142   : > { %1342 = vmatmul.mubr.bf16.gmra.mrb[56].mxu1 %v2805_v28  ;;  %1188 = vmatprep.mubr.bf16.mxu0 %v2806_v29 }
 0x143   : > { %1349 = vmatprep.mubr.bf16.mxu1 %v2808_v30 }
 0x149   : > { %1189 = vmatmul.mubr.bf16.gmra.mrb[60].mxu0 %v2810_v31 }
 0x14a   : > { %1350 = vmatmul.mubr.bf16.gmra.mrb[60].mxu1 %v2811_v32  ;;  %v370_v32 = vld [vmem:[#allocation2 + $0x30] sm:$0xff] }
 0x1a4   : > { %v2282_v33 = vpop.f32.mrb[0].mxu0 }
 0x1a5   : > { %v2394_v34 = vpop.f32.mrb[0].mxu1  ;;  %v2283_v35 = vpop.f32.mrb[1].mxu0 }
 0x1a6   : > { %v2284_v36 = vadd.f32 %v2283_v35, %v2282_v33  ;;  %v2395_v37 = vpop.f32.mrb[1].mxu1  ;;  %v2285_v38 = vpop.f32.mrb[2].mxu0 }
 0x1a7   : > { %v2396_v39 = vadd.f32 %v2395_v37, %v2394_v34  ;;  %v2397_v40 = vpop.f32.mrb[2].mxu1  ;;  %v2286_v41 = vpop.f32.mrb[3].mxu0  ;;  %v371_v37 = vld [vmem:[#allocation2 + $0x38] sm:$0xff] }
 0x1a8   : > { %v2287_v43 = vadd.f32 %v2286_v41, %v2285_v38  ;;  %v2398_v44 = vpop.f32.mrb[3].mxu1 }
 0x1a9   : > { %v1232_v45 = vadd.f32 %v2396_v39, %v2284_v36  ;;  %v2399_v46 = vadd.f32 %v2398_v44, %v2397_v40 }
 0x1ab   : > { %v1358_v48 = vadd.f32 %v1232_v45, %v364_v42  ;;  %v1235_v49 = vadd.f32 %v2399_v46, %v2287_v43 }
 0x1ac   : > { %v2288_v50 = vpop.f32.mrb[4].mxu0 }
 0x1ad   : > { %1390 = vst [vmem:[#allocation2] sm:$0xff] %v1358_v48  ;;  %v1359_v51 = vadd.f32 %v1235_v49, %v365_v47  ;;  %v2400_v52 = vpop.f32.mrb[4].mxu1  ;;  %v2289_v53 = vpop.f32.mrb[5].mxu0 }
 0x1ae   : > { %v2290_v54 = vadd.f32 %v2289_v53, %v2288_v50  ;;  %v2401_v55 = vpop.f32.mrb[5].mxu1  ;;  %v2291_v56 = vpop.f32.mrb[6].mxu0  ;;  %v372_v50 = vld [vmem:[#allocation2 + $0x40] sm:$0xff] }
 0x1af   : > { %1391 = vst [vmem:[#allocation2 + $0x8] sm:$0xff] %v1359_v51  ;;  %v2402_v57 = vadd.f32 %v2401_v55, %v2400_v52  ;;  %v2403_v58 = vpop.f32.mrb[6].mxu1  ;;  %v2292_v59 = vpop.f32.mrb[7].mxu0  ;;  %v373_v55 = vld [vmem:[#allocation2 + $0x48] sm:$0xff] }
 0x1b0   : > { %v2293_v61 = vadd.f32 %v2292_v59, %v2291_v56  ;;  %v2404_v62 = vpop.f32.mrb[7].mxu1 }
 0x1b1   : > { %v1240_v63 = vadd.f32 %v2402_v57, %v2290_v54  ;;  %v2405_v0 = vadd.f32 %v2404_v62, %v2403_v58 }
 0x1b3   : > { %v1360_v2 = vadd.f32 %v1240_v63, %v366_v60  ;;  %v1243_v3 = vadd.f32 %v2405_v0, %v2293_v61 }
 0x1b4   : > { %v2294_v4 = vpop.f32.mrb[8].mxu0 }
 0x1b5   : > { %1392 = vst [vmem:[#allocation2 + $0x10] sm:$0xff] %v1360_v2  ;;  %v1361_v5 = vadd.f32 %v1243_v3, %v367_v1  ;;  %v2406_v6 = vpop.f32.mrb[8].mxu1  ;;  %v2295_v7 = vpop.f32.mrb[9].mxu0 }
 0x1b6   : > { %v2296_v8 = vadd.f32 %v2295_v7, %v2294_v4  ;;  %v2407_v9 = vpop.f32.mrb[9].mxu1  ;;  %v2297_v10 = vpop.f32.mrb[10].mxu0  ;;  %v374_v4 = vld [vmem:[#allocation2 + $0x50] sm:$0xff] }
 0x1b7   : > { %1393 = vst [vmem:[#allocation2 + $0x18] sm:$0xff] %v1361_v5  ;;  %v2408_v11 = vadd.f32 %v2407_v9, %v2406_v6  ;;  %v2409_v12 = vpop.f32.mrb[10].mxu1  ;;  %v2298_v13 = vpop.f32.mrb[11].mxu0  ;;  %v375_v9 = vld [vmem:[#allocation2 + $0x58] sm:$0xff] }
 0x1b8   : > { %v2299_v15 = vadd.f32 %v2298_v13, %v2297_v10  ;;  %v2410_v16 = vpop.f32.mrb[11].mxu1 }
 0x1b9   : > { %v1248_v17 = vadd.f32 %v2408_v11, %v2296_v8  ;;  %v2411_v18 = vadd.f32 %v2410_v16, %v2409_v12 }
 0x1bb   : > { %v1362_v20 = vadd.f32 %v1248_v17, %v368_v14  ;;  %v1251_v21 = vadd.f32 %v2411_v18, %v2299_v15 }
 0x1bc   : > { %v2300_v22 = vpop.f32.mrb[12].mxu0 }
 0x1bd   : > { %1394 = vst [vmem:[#allocation2 + $0x20] sm:$0xff] %v1362_v20  ;;  %v1363_v23 = vadd.f32 %v1251_v21, %v369_v19  ;;  %v2412_v24 = vpop.f32.mrb[12].mxu1  ;;  %v2301_v25 = vpop.f32.mrb[13].mxu0 }
 0x1be   : > { %v2302_v26 = vadd.f32 %v2301_v25, %v2300_v22  ;;  %v2413_v27 = vpop.f32.mrb[13].mxu1  ;;  %v2303_v28 = vpop.f32.mrb[14].mxu0  ;;  %v376_v22 = vld [vmem:[#allocation2 + $0x60] sm:$0xff] }
 0x1bf   : > { %1395 = vst [vmem:[#allocation2 + $0x28] sm:$0xff] %v1363_v23  ;;  %v2414_v29 = vadd.f32 %v2413_v27, %v2412_v24  ;;  %v2415_v30 = vpop.f32.mrb[14].mxu1  ;;  %v2304_v31 = vpop.f32.mrb[15].mxu0  ;;  %v377_v27 = vld [vmem:[#allocation2 + $0x68] sm:$0xff] }
 0x1c0   : > { %v2305_v33 = vadd.f32 %v2304_v31, %v2303_v28  ;;  %v2416_v34 = vpop.f32.mrb[15].mxu1 }
 0x1c1   : > { %v1256_v35 = vadd.f32 %v2414_v29, %v2302_v26  ;;  %v2417_v36 = vadd.f32 %v2416_v34, %v2415_v30 }
 0x1c3   : > { %v1364_v38 = vadd.f32 %v1256_v35, %v370_v32  ;;  %v1259_v39 = vadd.f32 %v2417_v36, %v2305_v33 }
 0x1c4   : > { %v2306_v40 = vpop.f32.mrb[16].mxu0 }
 0x1c5   : > { %1396 = vst [vmem:[#allocation2 + $0x30] sm:$0xff] %v1364_v38  ;;  %v1365_v41 = vadd.f32 %v1259_v39, %v371_v37  ;;  %v2418_v42 = vpop.f32.mrb[16].mxu1  ;;  %v2307_v43 = vpop.f32.mrb[17].mxu0 }
 0x1c6   : > { %v2308_v44 = vadd.f32 %v2307_v43, %v2306_v40  ;;  %v2419_v45 = vpop.f32.mrb[17].mxu1  ;;  %v2309_v46 = vpop.f32.mrb[18].mxu0  ;;  %v378_v40 = vld [vmem:[#allocation2 + $0x70] sm:$0xff] }
 0x1c7   : > { %1397 = vst [vmem:[#allocation2 + $0x38] sm:$0xff] %v1365_v41  ;;  %v2420_v47 = vadd.f32 %v2419_v45, %v2418_v42  ;;  %v2421_v48 = vpop.f32.mrb[18].mxu1  ;;  %v2310_v49 = vpop.f32.mrb[19].mxu0  ;;  %v379_v45 = vld [vmem:[#allocation2 + $0x78] sm:$0xff] }
 0x1c8   : > { %v2311_v51 = vadd.f32 %v2310_v49, %v2309_v46  ;;  %v2422_v52 = vpop.f32.mrb[19].mxu1 }
 0x1c9   : > { %v1264_v53 = vadd.f32 %v2420_v47, %v2308_v44  ;;  %v2423_v54 = vadd.f32 %v2422_v52, %v2421_v48 }
 0x1cb   : > { %v1366_v56 = vadd.f32 %v1264_v53, %v372_v50  ;;  %v1267_v57 = vadd.f32 %v2423_v54, %v2311_v51 }
 0x1cc   : > { %v2312_v58 = vpop.f32.mrb[20].mxu0 }
 0x1cd   : > { %1398 = vst [vmem:[#allocation2 + $0x40] sm:$0xff] %v1366_v56  ;;  %v1367_v59 = vadd.f32 %v1267_v57, %v373_v55  ;;  %v2424_v60 = vpop.f32.mrb[20].mxu1  ;;  %v2313_v61 = vpop.f32.mrb[21].mxu0 }
 0x1ce   : > { %v2314_v62 = vadd.f32 %v2313_v61, %v2312_v58  ;;  %v2425_v63 = vpop.f32.mrb[21].mxu1  ;;  %v2315_v0 = vpop.f32.mrb[22].mxu0  ;;  %v380_v58 = vld [vmem:[#allocation2 + $0x80] sm:$0xff] }
 0x1cf   : > { %1399 = vst [vmem:[#allocation2 + $0x48] sm:$0xff] %v1367_v59  ;;  %v2426_v1 = vadd.f32 %v2425_v63, %v2424_v60  ;;  %v2427_v2 = vpop.f32.mrb[22].mxu1  ;;  %v2316_v3 = vpop.f32.mrb[23].mxu0  ;;  %v381_v63 = vld [vmem:[#allocation2 + $0x88] sm:$0xff] }
 0x1d0   : > { %v2317_v5 = vadd.f32 %v2316_v3, %v2315_v0  ;;  %v2428_v6 = vpop.f32.mrb[23].mxu1 }
 0x1d1   : > { %v1272_v7 = vadd.f32 %v2426_v1, %v2314_v62  ;;  %v2429_v8 = vadd.f32 %v2428_v6, %v2427_v2 }
 0x1d3   : > { %v1368_v10 = vadd.f32 %v1272_v7, %v374_v4  ;;  %v1275_v11 = vadd.f32 %v2429_v8, %v2317_v5 }
 0x1d4   : > { %v2318_v12 = vpop.f32.mrb[24].mxu0 }
 0x1d5   : > { %1400 = vst [vmem:[#allocation2 + $0x50] sm:$0xff] %v1368_v10  ;;  %v1369_v13 = vadd.f32 %v1275_v11, %v375_v9  ;;  %v2430_v14 = vpop.f32.mrb[24].mxu1  ;;  %v2319_v15 = vpop.f32.mrb[25].mxu0 }
 0x1d6   : > { %v2320_v16 = vadd.f32 %v2319_v15, %v2318_v12  ;;  %v2431_v17 = vpop.f32.mrb[25].mxu1  ;;  %v2321_v18 = vpop.f32.mrb[26].mxu0  ;;  %v382_v12 = vld [vmem:[#allocation2 + $0x90] sm:$0xff] }
 0x1d7   : > { %1401 = vst [vmem:[#allocation2 + $0x58] sm:$0xff] %v1369_v13  ;;  %v2432_v19 = vadd.f32 %v2431_v17, %v2430_v14  ;;  %v2433_v20 = vpop.f32.mrb[26].mxu1  ;;  %v2322_v21 = vpop.f32.mrb[27].mxu0  ;;  %v383_v17 = vld [vmem:[#allocation2 + $0x98] sm:$0xff] }
 0x1d8   : > { %v2323_v23 = vadd.f32 %v2322_v21, %v2321_v18  ;;  %v2434_v24 = vpop.f32.mrb[27].mxu1 }
 0x1d9   : > { %v1280_v25 = vadd.f32 %v2432_v19, %v2320_v16  ;;  %v2435_v26 = vadd.f32 %v2434_v24, %v2433_v20 }
 0x1db   : > { %v1370_v28 = vadd.f32 %v1280_v25, %v376_v22  ;;  %v1283_v29 = vadd.f32 %v2435_v26, %v2323_v23 }
 0x1dc   : > { %v2324_v30 = vpop.f32.mrb[28].mxu0 }
 0x1dd   : > { %1402 = vst [vmem:[#allocation2 + $0x60] sm:$0xff] %v1370_v28  ;;  %v1371_v31 = vadd.f32 %v1283_v29, %v377_v27  ;;  %v2436_v32 = vpop.f32.mrb[28].mxu1  ;;  %v2325_v33 = vpop.f32.mrb[29].mxu0 }
 0x1de   : > { %v2326_v34 = vadd.f32 %v2325_v33, %v2324_v30  ;;  %v2437_v35 = vpop.f32.mrb[29].mxu1  ;;  %v2327_v36 = vpop.f32.mrb[30].mxu0  ;;  %v384_v30 = vld [vmem:[#allocation2 + $0xa0] sm:$0xff] }
 0x1df   : > { %1403 = vst [vmem:[#allocation2 + $0x68] sm:$0xff] %v1371_v31  ;;  %v2438_v37 = vadd.f32 %v2437_v35, %v2436_v32  ;;  %v2439_v38 = vpop.f32.mrb[30].mxu1  ;;  %v2328_v39 = vpop.f32.mrb[31].mxu0  ;;  %v385_v35 = vld [vmem:[#allocation2 + $0xa8] sm:$0xff] }
 0x1e0   : > { %v2329_v41 = vadd.f32 %v2328_v39, %v2327_v36  ;;  %v2440_v42 = vpop.f32.mrb[31].mxu1 }
 0x1e1   : > { %v1288_v43 = vadd.f32 %v2438_v37, %v2326_v34  ;;  %v2441_v44 = vadd.f32 %v2440_v42, %v2439_v38 }
 0x1e3   : > { %v1372_v46 = vadd.f32 %v1288_v43, %v378_v40  ;;  %v1291_v47 = vadd.f32 %v2441_v44, %v2329_v41 }
 0x1e4   : > { %v2330_v48 = vpop.f32.mrb[32].mxu0 }
 0x1e5   : > { %1404 = vst [vmem:[#allocation2 + $0x70] sm:$0xff] %v1372_v46  ;;  %v1373_v49 = vadd.f32 %v1291_v47, %v379_v45  ;;  %v2442_v50 = vpop.f32.mrb[32].mxu1  ;;  %v2331_v51 = vpop.f32.mrb[33].mxu0 }
 0x1e6   : > { %v2332_v52 = vadd.f32 %v2331_v51, %v2330_v48  ;;  %v2443_v53 = vpop.f32.mrb[33].mxu1  ;;  %v2333_v54 = vpop.f32.mrb[34].mxu0  ;;  %v386_v48 = vld [vmem:[#allocation2 + $0xb0] sm:$0xff] }
 0x1e7   : > { %1405 = vst [vmem:[#allocation2 + $0x78] sm:$0xff] %v1373_v49  ;;  %v2444_v55 = vadd.f32 %v2443_v53, %v2442_v50  ;;  %v2445_v56 = vpop.f32.mrb[34].mxu1  ;;  %v2334_v57 = vpop.f32.mrb[35].mxu0  ;;  %v387_v53 = vld [vmem:[#allocation2 + $0xb8] sm:$0xff] }
 0x1e8   : > { %v2335_v59 = vadd.f32 %v2334_v57, %v2333_v54  ;;  %v2446_v60 = vpop.f32.mrb[35].mxu1 }
 0x1e9   : > { %v1296_v61 = vadd.f32 %v2444_v55, %v2332_v52  ;;  %v2447_v62 = vadd.f32 %v2446_v60, %v2445_v56 }
 0x1eb   : > { %v1374_v0 = vadd.f32 %v1296_v61, %v380_v58  ;;  %v1299_v1 = vadd.f32 %v2447_v62, %v2335_v59 }
 0x1ec   : > { %v2336_v2 = vpop.f32.mrb[36].mxu0 }
 0x1ed   : > { %1406 = vst [vmem:[#allocation2 + $0x80] sm:$0xff] %v1374_v0  ;;  %v1375_v3 = vadd.f32 %v1299_v1, %v381_v63  ;;  %v2448_v4 = vpop.f32.mrb[36].mxu1  ;;  %v2337_v5 = vpop.f32.mrb[37].mxu0 }
 0x1ee   : > { %v2338_v6 = vadd.f32 %v2337_v5, %v2336_v2  ;;  %v2449_v7 = vpop.f32.mrb[37].mxu1  ;;  %v2339_v8 = vpop.f32.mrb[38].mxu0  ;;  %v388_v2 = vld [vmem:[#allocation2 + $0xc0] sm:$0xff] }
 0x1ef   : > { %1407 = vst [vmem:[#allocation2 + $0x88] sm:$0xff] %v1375_v3  ;;  %v2450_v9 = vadd.f32 %v2449_v7, %v2448_v4  ;;  %v2451_v10 = vpop.f32.mrb[38].mxu1  ;;  %v2340_v11 = vpop.f32.mrb[39].mxu0  ;;  %v389_v7 = vld [vmem:[#allocation2 + $0xc8] sm:$0xff] }
 0x1f0   : > { %v2341_v13 = vadd.f32 %v2340_v11, %v2339_v8  ;;  %v2452_v14 = vpop.f32.mrb[39].mxu1 }
 0x1f1   : > { %v1304_v15 = vadd.f32 %v2450_v9, %v2338_v6  ;;  %v2453_v16 = vadd.f32 %v2452_v14, %v2451_v10 }
 0x1f3   : > { %v1376_v18 = vadd.f32 %v1304_v15, %v382_v12  ;;  %v1307_v19 = vadd.f32 %v2453_v16, %v2341_v13 }
 0x1f4   : > { %v2342_v20 = vpop.f32.mrb[40].mxu0 }
 0x1f5   : > { %1408 = vst [vmem:[#allocation2 + $0x90] sm:$0xff] %v1376_v18  ;;  %v1377_v21 = vadd.f32 %v1307_v19, %v383_v17  ;;  %v2454_v22 = vpop.f32.mrb[40].mxu1  ;;  %v2343_v23 = vpop.f32.mrb[41].mxu0 }
 0x1f6   : > { %v2344_v24 = vadd.f32 %v2343_v23, %v2342_v20  ;;  %v2455_v25 = vpop.f32.mrb[41].mxu1  ;;  %v2345_v26 = vpop.f32.mrb[42].mxu0  ;;  %v390_v20 = vld [vmem:[#allocation2 + $0xd0] sm:$0xff] }
 0x1f7   : > { %1409 = vst [vmem:[#allocation2 + $0x98] sm:$0xff] %v1377_v21  ;;  %v2456_v27 = vadd.f32 %v2455_v25, %v2454_v22  ;;  %v2457_v28 = vpop.f32.mrb[42].mxu1  ;;  %v2346_v29 = vpop.f32.mrb[43].mxu0  ;;  %v391_v25 = vld [vmem:[#allocation2 + $0xd8] sm:$0xff] }
 0x1f8   : > { %v2347_v31 = vadd.f32 %v2346_v29, %v2345_v26  ;;  %v2458_v32 = vpop.f32.mrb[43].mxu1 }
 0x1f9   : > { %v1312_v33 = vadd.f32 %v2456_v27, %v2344_v24  ;;  %v2459_v34 = vadd.f32 %v2458_v32, %v2457_v28 }
 0x1fb   : > { %v1378_v36 = vadd.f32 %v1312_v33, %v384_v30  ;;  %v1315_v37 = vadd.f32 %v2459_v34, %v2347_v31 }
 0x1fc   : > { %v2348_v38 = vpop.f32.mrb[44].mxu0 }
 0x1fd   : > { %1410 = vst [vmem:[#allocation2 + $0xa0] sm:$0xff] %v1378_v36  ;;  %v1379_v39 = vadd.f32 %v1315_v37, %v385_v35  ;;  %v2460_v40 = vpop.f32.mrb[44].mxu1  ;;  %v2349_v41 = vpop.f32.mrb[45].mxu0 }
 0x1fe   : > { %v2350_v42 = vadd.f32 %v2349_v41, %v2348_v38  ;;  %v2461_v43 = vpop.f32.mrb[45].mxu1  ;;  %v2351_v44 = vpop.f32.mrb[46].mxu0  ;;  %v392_v38 = vld [vmem:[#allocation2 + $0xe0] sm:$0xff] }
 0x1ff   : > { %1411 = vst [vmem:[#allocation2 + $0xa8] sm:$0xff] %v1379_v39  ;;  %v2462_v45 = vadd.f32 %v2461_v43, %v2460_v40  ;;  %v2463_v46 = vpop.f32.mrb[46].mxu1  ;;  %v2352_v47 = vpop.f32.mrb[47].mxu0  ;;  %v393_v43 = vld [vmem:[#allocation2 + $0xe8] sm:$0xff] }
 0x200   : > { %v2353_v49 = vadd.f32 %v2352_v47, %v2351_v44  ;;  %v2464_v50 = vpop.f32.mrb[47].mxu1 }
 0x201   : > { %v1320_v51 = vadd.f32 %v2462_v45, %v2350_v42  ;;  %v2465_v52 = vadd.f32 %v2464_v50, %v2463_v46 }
 0x203   : > { %v1380_v54 = vadd.f32 %v1320_v51, %v386_v48  ;;  %v1323_v55 = vadd.f32 %v2465_v52, %v2353_v49 }
 0x204   : > { %v2354_v56 = vpop.f32.mrb[48].mxu0 }
 0x205   : > { %1412 = vst [vmem:[#allocation2 + $0xb0] sm:$0xff] %v1380_v54  ;;  %v1381_v57 = vadd.f32 %v1323_v55, %v387_v53  ;;  %v2466_v58 = vpop.f32.mrb[48].mxu1  ;;  %v2355_v59 = vpop.f32.mrb[49].mxu0 }
 0x206   : > { %v2356_v60 = vadd.f32 %v2355_v59, %v2354_v56  ;;  %v2467_v61 = vpop.f32.mrb[49].mxu1  ;;  %v2357_v62 = vpop.f32.mrb[50].mxu0  ;;  %v394_v56 = vld [vmem:[#allocation2 + $0xf0] sm:$0xff] }
 0x207   : > { %1413 = vst [vmem:[#allocation2 + $0xb8] sm:$0xff] %v1381_v57  ;;  %v2468_v63 = vadd.f32 %v2467_v61, %v2466_v58  ;;  %v2469_v0 = vpop.f32.mrb[50].mxu1  ;;  %v2358_v1 = vpop.f32.mrb[51].mxu0  ;;  %v395_v61 = vld [vmem:[#allocation2 + $0xf8] sm:$0xff] }
 0x208   : > { %v2359_v3 = vadd.f32 %v2358_v1, %v2357_v62  ;;  %v2470_v4 = vpop.f32.mrb[51].mxu1  ;;  %v1426_v1 = vld [vmem:[#allocation2] sm:$0xff] (!%p2096_p12) }
 0x209   : > { %v1328_v5 = vadd.f32 %v2468_v63, %v2356_v60  ;;  %v2471_v6 = vadd.f32 %v2470_v4, %v2469_v0 }
 0x20b   : > { %v1382_v8 = vadd.f32 %v1328_v5, %v388_v2  ;;  %v1331_v9 = vadd.f32 %v2471_v6, %v2359_v3  ;;  %v1427_v2 = vld [vmem:[#allocation2 + $0x8] sm:$0xff] (!%p2096_p12)  ;;  %v1428_v3 = vld [vmem:[#allocation2 + $0x10] sm:$0xff] (!%p2096_p12)  ;;  %v1655_v6 = vmul.f32 (!%p2096_p12), %v1426_v1, %v1426_v1 }
 0x20c   : > { %v2360_v10 = vpop.f32.mrb[52].mxu0  ;;  %v2174_v4 = vpack.c.bf16 (!%p2096_p12), %v1427_v2, %v1426_v1  ;;  %v1618_v5 = vadd.f32 (!%p2096_p12), %v1427_v2, %v1426_v1 }
 0x20d   : > { %1414 = vst [vmem:[#allocation2 + $0xc0] sm:$0xff] %v1382_v8  ;;  %v1383_v11 = vadd.f32 %v1331_v9, %v389_v7  ;;  %v2472_v12 = vpop.f32.mrb[52].mxu1  ;;  %v2361_v13 = vpop.f32.mrb[53].mxu0  ;;  %v1656_v7 = vmul.f32 (!%p2096_p12), %v1427_v2, %v1427_v2  ;;  %v1429_v8 = vld [vmem:[#allocation2 + $0x18] sm:$0xff] (!%p2096_p12)  ;;  %v1430_v9 = vld [vmem:[#allocation2 + $0x20] sm:$0xff] (!%p2096_p12) }
 0x20e   : > { %v2362_v14 = vadd.f32 %v2361_v13, %v2360_v10  ;;  %v2473_v15 = vpop.f32.mrb[53].mxu1  ;;  %v2363_v16 = vpop.f32.mrb[54].mxu0  ;;  %v1431_v10 = vld [vmem:[#allocation2 + $0x28] sm:$0xff] (!%p2096_p12)  ;;  %2175 = vst [vmem:[%s3495_s9] sm:$0xff] (!%p2096_p12), %v2174_v4  }
 0x20f   : > { %1415 = vst [vmem:[#allocation2 + $0xc8] sm:$0xff] %v1383_v11  ;;  %v2474_v17 = vadd.f32 %v2473_v15, %v2472_v12  ;;  %v2475_v18 = vpop.f32.mrb[54].mxu1  ;;  %v2364_v19 = vpop.f32.mrb[55].mxu0  ;;  %v2179_v11 = vpack.c.bf16 (!%p2096_p12), %v1429_v8, %v1428_v3  ;;  %v1657_v12 = vmul.f32 (!%p2096_p12), %v1428_v3, %v1428_v3  ;;  %v2184_v13 = vpack.c.bf16 (!%p2096_p12), %v1431_v10, %v1430_v9 }
 0x210   : > { %v2365_v21 = vadd.f32 %v2364_v19, %v2363_v16  ;;  %v2476_v22 = vpop.f32.mrb[55].mxu1  ;;  %v1687_v15 = vadd.f32 (!%p2096_p12), %v1656_v7, %v1655_v6  ;;  %v1619_v16 = vadd.f32 (!%p2096_p12), %v1618_v5, %v1428_v3  ;;  %v1434_v19 = vld [vmem:[#allocation2 + $0x40] sm:$0xff] (!%p2096_p12) }
 0x211   : > { %v1336_v23 = vadd.f32 %v2474_v17, %v2362_v14  ;;  %v2477_v24 = vadd.f32 %v2476_v22, %v2475_v18  ;;  %v1432_v14 = vld [vmem:[#allocation2 + $0x30] sm:$0xff] (!%p2096_p12)  ;;  %v1658_v17 = vmul.f32 (!%p2096_p12), %v1429_v8, %v1429_v8  ;;  %v1433_v18 = vld [vmem:[#allocation2 + $0x38] sm:$0xff] (!%p2096_p12)  ;;  %2251 = vst [vmem:[%s3495_s9 + $0x8] sm:$0xff] (!%p2096_p12), %v2179_v11   ;;  %2252 = vst [vmem:[%s3495_s9 + $0x10] sm:$0xff] (!%p2096_p12), %v2184_v13  }
 0x213   : > { %v1384_v26 = vadd.f32 %v1336_v23, %v390_v20  ;;  %v1339_v27 = vadd.f32 %v2477_v24, %v2365_v21  ;;  %v3600_v20 = vld [vmem:[#allocation2 + $0x48] sm:$0xff] (!%p2096_p12)  ;;  %v2189_v21 = vpack.c.bf16 (!%p2096_p12), %v1433_v18, %v1432_v14  ;;  %v3605_v23 = vld [vmem:[#allocation2 + $0x50] sm:$0xff] (!%p2096_p12)  ;;  %v1620_v24 = vadd.f32 (!%p2096_p12), %v1619_v16, %v1429_v8 }
 0x214   : > { %v2366_v28 = vpop.f32.mrb[56].mxu0  ;;  %v2194_v22 = vpack.c.bf16 (!%p2096_p12), %v3600_v20, %v1434_v19  ;;  %v1664_v6 = vmul.f32 (!%p2096_p12), %v3600_v20, %v3600_v20 }
 0x215   : > { %1416 = vst [vmem:[#allocation2 + $0xd0] sm:$0xff] %v1384_v26  ;;  %v1385_v29 = vadd.f32 %v1339_v27, %v391_v25  ;;  %v2478_v30 = vpop.f32.mrb[56].mxu1  ;;  %v2367_v31 = vpop.f32.mrb[57].mxu0  ;;  %v1688_v25 = vadd.f32 (!%p2096_p12), %v1687_v15, %v1657_v12  ;;  %v1659_v26 = vmul.f32 (!%p2096_p12), %v1430_v9, %v1430_v9  ;;  %v3607_v27 = vld [vmem:[#allocation2 + $0x58] sm:$0xff] (!%p2096_p12)  ;;  %2253 = vst [vmem:[%s3495_s9 + $0x18] sm:$0xff] (!%p2096_p12), %v2189_v21  }
 0x216   : > { %v2368_v32 = vadd.f32 %v2367_v31, %v2366_v28  ;;  %v2479_v33 = vpop.f32.mrb[57].mxu1  ;;  %v2369_v34 = vpop.f32.mrb[58].mxu0  ;;  %v3609_v28 = vld [vmem:[#allocation2 + $0x60] sm:$0xff] (!%p2096_p12)  ;;  %2254 = vst [vmem:[%s3495_s9 + $0x20] sm:$0xff] (!%p2096_p12), %v2194_v22   ;;  %v1665_v12 = vmul.f32 (!%p2096_p12), %v3605_v23, %v3605_v23  ;;  %v1666_v15 = vmul.f32 (!%p2096_p12), %v3607_v27, %v3607_v27 }
 0x217   : > { %1417 = vst [vmem:[#allocation2 + $0xd8] sm:$0xff] %v1385_v29  ;;  %v2480_v35 = vadd.f32 %v2479_v33, %v2478_v30  ;;  %v2481_v36 = vpop.f32.mrb[58].mxu1  ;;  %v2370_v37 = vpop.f32.mrb[59].mxu0  ;;  %v3611_v29 = vld [vmem:[#allocation2 + $0x68] sm:$0xff] (!%p2096_p12)  ;;  %v2199_v30 = vpack.c.bf16 (!%p2096_p12), %v3607_v27, %v3605_v23  ;;  %v1689_v33 = vadd.f32 (!%p2096_p12), %v1688_v25, %v1658_v17 }
 0x218   : > { %v2371_v39 = vadd.f32 %v2370_v37, %v2369_v34  ;;  %v2482_v40 = vpop.f32.mrb[59].mxu1  ;;  %v2204_v31 = vpack.c.bf16 (!%p2096_p12), %v3611_v29, %v3609_v28  ;;  %v1621_v34 = vadd.f32 (!%p2096_p12), %v1620_v24, %v1430_v9  ;;  %v3623_v37 = vld [vmem:[#allocation2 + $0x80] sm:$0xff] (!%p2096_p12)  ;;  %v1668_v21 = vmul.f32 (!%p2096_p12), %v3611_v29, %v3611_v29 }
 0x219   : > { %v1344_v41 = vadd.f32 %v2480_v35, %v2368_v32  ;;  %v2483_v42 = vadd.f32 %v2482_v40, %v2481_v36  ;;  %v3619_v32 = vld [vmem:[#allocation2 + $0x70] sm:$0xff] (!%p2096_p12)  ;;  %v1660_v35 = vmul.f32 (!%p2096_p12), %v1431_v10, %v1431_v10  ;;  %v3621_v36 = vld [vmem:[#allocation2 + $0x78] sm:$0xff] (!%p2096_p12)  ;;  %2255 = vst [vmem:[%s3495_s9 + $0x28] sm:$0xff] (!%p2096_p12), %v2199_v30  }
 0x21a   : > { %2256 = vst [vmem:[%s3495_s9 + $0x30] sm:$0xff] (!%p2096_p12), %v2204_v31  }
 0x21b   : > { %v1386_v44 = vadd.f32 %v1344_v41, %v392_v38  ;;  %v1347_v45 = vadd.f32 %v2483_v42, %v2371_v39  ;;  %v3625_v38 = vld [vmem:[#allocation2 + $0x88] sm:$0xff] (!%p2096_p12)  ;;  %v2209_v39 = vpack.c.bf16 (!%p2096_p12), %v3621_v36, %v3619_v32  ;;  %v3633_v41 = vld [vmem:[#allocation2 + $0x90] sm:$0xff] (!%p2096_p12)  ;;  %v1622_v42 = vadd.f32 (!%p2096_p12), %v1621_v34, %v1431_v10 }
 0x21c   : > { %v2372_v46 = vpop.f32.mrb[60].mxu0  ;;  %v2214_v40 = vpack.c.bf16 (!%p2096_p12), %v3625_v38, %v3623_v37 }
 0x21d   : > { %1418 = vst [vmem:[#allocation2 + $0xe0] sm:$0xff] %v1386_v44  ;;  %v1387_v47 = vadd.f32 %v1347_v45, %v393_v43  ;;  %v2484_v48 = vpop.f32.mrb[60].mxu1  ;;  %v2373_v49 = vpop.f32.mrb[61].mxu0  ;;  %v1690_v43 = vadd.f32 (!%p2096_p12), %v1689_v33, %v1659_v26  ;;  %v1661_v44 = vmul.f32 (!%p2096_p12), %v1432_v14, %v1432_v14  ;;  %v3635_v45 = vld [vmem:[#allocation2 + $0x98] sm:$0xff] (!%p2096_p12)  ;;  %2257 = vst [vmem:[%s3495_s9 + $0x38] sm:$0xff] (!%p2096_p12), %v2209_v39  }
 0x21e   : > { %v2374_v50 = vadd.f32 %v2373_v49, %v2372_v46  ;;  %v2485_v51 = vpop.f32.mrb[61].mxu1  ;;  %v2375_v52 = vpop.f32.mrb[62].mxu0  ;;  %v3637_v46 = vld [vmem:[#allocation2 + $0xa0] sm:$0xff] (!%p2096_p12)  ;;  %2258 = vst [vmem:[%s3495_s9 + $0x40] sm:$0xff] (!%p2096_p12), %v2214_v40  }
 0x21f   : > { %1419 = vst [vmem:[#allocation2 + $0xe8] sm:$0xff] %v1387_v47  ;;  %v2486_v53 = vadd.f32 %v2485_v51, %v2484_v48  ;;  %v2487_v54 = vpop.f32.mrb[62].mxu1  ;;  %v2376_v55 = vpop.f32.mrb[63].mxu0  ;;  %v3639_v47 = vld [vmem:[#allocation2 + $0xa8] sm:$0xff] (!%p2096_p12)  ;;  %v2219_v48 = vpack.c.bf16 (!%p2096_p12), %v3635_v45, %v3633_v41  ;;  %v1691_v51 = vadd.f32 (!%p2096_p12), %v1690_v43, %v1660_v35 }
 0x220   : > { %v2377_v57 = vadd.f32 %v2376_v55, %v2375_v52  ;;  %v2488_v58 = vpop.f32.mrb[63].mxu1  ;;  %v2224_v49 = vpack.c.bf16 (!%p2096_p12), %v3639_v47, %v3637_v46  ;;  %v1623_v52 = vadd.f32 (!%p2096_p12), %v1622_v42, %v1432_v14  ;;  %v3651_v55 = vld [vmem:[#allocation2 + $0xc0] sm:$0xff] (!%p2096_p12) }
 0x221   : > { %v1352_v59 = vadd.f32 %v2486_v53, %v2374_v50  ;;  %v2489_v60 = vadd.f32 %v2488_v58, %v2487_v54  ;;  %1425 = sbr.rel (%p2096_p12) target bundleno = 629 (0x275), region = 44  ;;  %v3647_v50 = vld [vmem:[#allocation2 + $0xb0] sm:$0xff] (!%p2096_p12)  ;;  %v1662_v53 = vmul.f32 (!%p2096_p12), %v1433_v18, %v1433_v18  ;;  %v3649_v54 = vld [vmem:[#allocation2 + $0xb8] sm:$0xff] (!%p2096_p12)  ;;  %2259 = vst [vmem:[%s3495_s9 + $0x48] sm:$0xff] (!%p2096_p12), %v2219_v48  }
 0x222   : > { %2260 = vst [vmem:[%s3495_s9 + $0x50] sm:$0xff] (!%p2096_p12), %v2224_v49  }
 0x223   : > { %v1388_v62 = vadd.f32 %v1352_v59, %v394_v56  ;;  %v1355_v63 = vadd.f32 %v2489_v60, %v2377_v57  ;;  %v3653_v56 = vld [vmem:[#allocation2 + $0xc8] sm:$0xff] (!%p2096_p12)  ;;  %v2229_v57 = vpack.c.bf16 (!%p2096_p12), %v3649_v54, %v3647_v50  ;;  %v3661_v59 = vld [vmem:[#allocation2 + $0xd0] sm:$0xff] (!%p2096_p12)  ;;  %v1624_v60 = vadd.f32 (!%p2096_p12), %v1623_v52, %v1433_v18 }
 0x224   : > { %v2234_v58 = vpack.c.bf16 (!%p2096_p12), %v3653_v56, %v3651_v55  ;;  %v1667_v18 = vmul.f32 (!%p2096_p12), %v3609_v28, %v3609_v28 }
 0x225   : > { %1420 = vst [vmem:[#allocation2 + $0xf0] sm:$0xff] %v1388_v62  ;;  %v1389_v0 = vadd.f32 %v1355_v63, %v395_v61  ;;  %v1692_v61 = vadd.f32 (!%p2096_p12), %v1691_v51, %v1661_v44  ;;  %v1663_v62 = vmul.f32 (!%p2096_p12), %v1434_v19, %v1434_v19  ;;  %v3663_v63 = vld [vmem:[#allocation2 + $0xd8] sm:$0xff] (!%p2096_p12)  ;;  %2261 = vst [vmem:[%s3495_s9 + $0x58] sm:$0xff] (!%p2096_p12), %v2229_v57  }
 0x226   : > { %v3667_v1 = vld [vmem:[#allocation2 + $0xe8] sm:$0xff] (!%p2096_p12)  ;;  %2262 = vst [vmem:[%s3495_s9 + $0x60] sm:$0xff] (!%p2096_p12), %v2234_v58   ;;  %v2239_v2 = vpack.c.bf16 (!%p2096_p12), %v3663_v63, %v3661_v59  ;;  %v1625_v5 = vadd.f32 (!%p2096_p12), %v1624_v60, %v1434_v19 }
 0x227   : > { %1421 = vst [vmem:[#allocation2 + $0xf8] sm:$0xff] %v1389_v0  ;;  %v3665_v0 = vld [vmem:[#allocation2 + $0xe0] sm:$0xff] (!%p2096_p12)  ;;  %v1693_v4 = vadd.f32 (!%p2096_p12), %v1692_v61, %v1662_v53 }
 0x228   : > { %v2244_v3 = vpack.c.bf16 %v3667_v1, %v3665_v0  ;;  %2263 = vst [vmem:[%s3495_s9 + $0x68] sm:$0xff] %v2239_v2   ;;  %v1626_v10 = vadd.f32 %v1625_v5, %v3600_v20 }
 0x229   : > { %v1694_v11 = vadd.f32 %v1693_v4, %v1663_v62 }
 0x22a   : > { %2264 = vst [vmem:[%s3495_s9 + $0x70] sm:$0xff] %v2244_v3   ;;  %v1627_v14 = vadd.f32 %v1626_v10, %v3605_v23  ;;  %v1669_v23 = vmul.f32 %v3619_v32, %v3619_v32 }
 0x22b   : > { %v1695_v13 = vadd.f32 %v1694_v11, %v1664_v6 }
 0x22c   : > { %v3677_v7 = vld [vmem:[#allocation2 + $0xf0] sm:$0xff]  ;;  %v1628_v16 = vadd.f32 %v1627_v14, %v3607_v27  ;;  %v1670_v27 = vmul.f32 %v3621_v36, %v3621_v36 }
 0x22d   : > { %v1696_v17 = vadd.f32 %v1695_v13, %v1665_v12 }
 0x22e   : > { %v3679_v8 = vld [vmem:[#allocation2 + $0xf8] sm:$0xff]  ;;  %v1629_v20 = vadd.f32 %v1628_v16, %v3609_v28  ;;  %v1671_v28 = vmul.f32 %v3623_v37, %v3623_v37 }
 0x22f   : > { %v2249_v9 = vpack.c.bf16 %v3679_v8, %v3677_v7  ;;  %v1697_v19 = vadd.f32 %v1696_v17, %v1666_v15 }
 0x230   : > { %v1630_v22 = vadd.f32 %v1629_v20, %v3611_v29  ;;  %v1672_v29 = vmul.f32 %v3625_v38, %v3625_v38 }
 0x231   : > { %2265 = vst [vmem:[%s3495_s9 + $0x78] sm:$0xff] %v2249_v9   ;;  %v1698_v24 = vadd.f32 %v1697_v19, %v1667_v18 }
 0x232   : > { %v1631_v26 = vadd.f32 %v1630_v22, %v3619_v32  ;;  %v1673_v32 = vmul.f32 %v3633_v41, %v3633_v41 }
 0x233   : > { %v1699_v25 = vadd.f32 %v1698_v24, %v1668_v21 }
 0x234   : > { %v1632_v30 = vadd.f32 %v1631_v26, %v3621_v36  ;;  %v1674_v36 = vmul.f32 %v3635_v45, %v3635_v45 }
 0x235   : > { %v1700_v31 = vadd.f32 %v1699_v25, %v1669_v23 }
 0x236   : > { %v1633_v34 = vadd.f32 %v1632_v30, %v3623_v37  ;;  %v1675_v37 = vmul.f32 %v3637_v46, %v3637_v46 }
 0x237   : > { %v1701_v33 = vadd.f32 %v1700_v31, %v1670_v27 }
 0x238   : > { %v1634_v35 = vadd.f32 %v1633_v34, %v3625_v38  ;;  %v1676_v38 = vmul.f32 %v3639_v47, %v3639_v47 }
 0x239   : > { %v1702_v39 = vadd.f32 %v1701_v33, %v1671_v28 }
 0x23a   : > { %v1635_v42 = vadd.f32 %v1634_v35, %v3633_v41  ;;  %v1677_v41 = vmul.f32 %v3647_v50, %v3647_v50 }
 0x23b   : > { %v1703_v40 = vadd.f32 %v1702_v39, %v1672_v29 }
 0x23c   : > { %v1636_v43 = vadd.f32 %v1635_v42, %v3635_v45  ;;  %v1678_v45 = vmul.f32 %v3649_v54, %v3649_v54 }
 0x23d   : > { %v1704_v44 = vadd.f32 %v1703_v40, %v1673_v32 }
 0x23e   : > { %v1637_v49 = vadd.f32 %v1636_v43, %v3637_v46  ;;  %v1679_v46 = vmul.f32 %v3651_v55, %v3651_v55 }
 0x23f   : > { %v1705_v48 = vadd.f32 %v1704_v44, %v1674_v36 }
 0x240   : > { %v1638_v51 = vadd.f32 %v1637_v49, %v3639_v47  ;;  %v1680_v47 = vmul.f32 %v3653_v56, %v3653_v56 }
 0x241   : > { %v1706_v52 = vadd.f32 %v1705_v48, %v1675_v37 }
 0x242   : > { %v1639_v57 = vadd.f32 %v1638_v51, %v3647_v50  ;;  %v1681_v50 = vmul.f32 %v3661_v59, %v3661_v59 }
 0x243   : > { %v1707_v53 = vadd.f32 %v1706_v52, %v1676_v38 }
 0x244   : > { %v1640_v58 = vadd.f32 %v1639_v57, %v3649_v54  ;;  %v1682_v54 = vmul.f32 %v3663_v63, %v3663_v63 }
 0x245   : > { %v1708_v60 = vadd.f32 %v1707_v53, %v1677_v41 }
 0x246   : > { %v1641_v62 = vadd.f32 %v1640_v58, %v3651_v55  ;;  %v1683_v55 = vmul.f32 %v3665_v0, %v3665_v0 }
 0x247   : > { %v1709_v61 = vadd.f32 %v1708_v60, %v1678_v45 }
 0x248   : > { %v1642_v2 = vadd.f32 %v1641_v62, %v3653_v56  ;;  %v1684_v56 = vmul.f32 %v3667_v1, %v3667_v1 }
 0x249   : > { %v1710_v3 = vadd.f32 %v1709_v61, %v1679_v46 }
 0x24a   : > { %v1643_v5 = vadd.f32 %v1642_v2, %v3661_v59  ;;  %v1685_v59 = vmul.f32 %v3677_v7, %v3677_v7 }
 0x24b   : > { %v1711_v4 = vadd.f32 %v1710_v3, %v1680_v47 }
 0x24c   : > { %v1644_v6 = vadd.f32 %v1643_v5, %v3663_v63  ;;  %v1686_v63 = vmul.f32 %v3679_v8, %v3679_v8 }
 0x24d   : > { %v1712_v9 = vadd.f32 %v1711_v4, %v1681_v50 }
 0x24e   : > { %v1645_v11 = vadd.f32 %v1644_v6, %v3665_v0 }
 0x24f   : > { %v1713_v10 = vadd.f32 %v1712_v9, %v1682_v54 }
 0x250   : > { %v1646_v12 = vadd.f32 %v1645_v11, %v3667_v1 }
 0x251   : > { %v1714_v13 = vadd.f32 %v1713_v10, %v1683_v55 }
 0x252   : > { %v1647_v15 = vadd.f32 %v1646_v12, %v3677_v7 }
 0x253   : > { %v1715_v14 = vadd.f32 %v1714_v13, %v1684_v56 }
 0x254   : > { %v1648_v16 = vadd.f32 %v1647_v15, %v3679_v8 }
 0x255   : > { %v1716_v17 = vadd.f32 %v1715_v14, %v1685_v59 }
 0x256   : > { %v1649_v18 = vrot.slane %v1648_v16, 4 }
 0x257   : > { %v1717_v0 = vadd.f32 %v1716_v17, %v1686_v63 }
 0x258   : > { %v1650_v19 = vadd.f32 %v1649_v18, %v1648_v16 }
 0x259   : > { %v1718_v20 = vrot.slane %v1717_v0, 4 }
 0x25a   : > { %v1651_v21 = vrot.slane %v1650_v19, 2 }
 0x25b   : > { %v1719_v22 = vadd.f32 %v1718_v20, %v1717_v0 }
 0x25c   : > { %v1652_v1 = vadd.f32 %v1651_v21, %v1650_v19 }
 0x25d   : > { %v1720_v24 = vrot.slane %v1719_v22, 2  ;;  %1727 = sbr.rel (%p2129_p9) target bundleno = 614 (0x266), region = 48 }
 0x25e   : > { %v1653_v23 = vrot.slane %v1652_v1, 1 }
 0x25f   : > { %v1721_v25 = vadd.f32 %v1720_v24, %v1719_v22 }
 0x260   : > { %v1654_v26 = vadd.f32 %v1653_v23, %v1652_v1 }
 0x261   : > { %v1722_v27 = vrot.slane %v1721_v25, 1 }
 0x262   : > { %1728 = vst [vmem:[%s3497_s2] sm:$0x1] (!%p2129_p9), %v1654_v26 }
 0x263   : > { %v1723_v30 = vadd.f32 %v1722_v27, %v1721_v25 }
 0x265   : > { %1729 = vst [vmem:[%s3499_s1] sm:$0x1] %v1723_v30 }
 0x266 PF: > { %s4022_s21 = sld [smem:[#allocation21_spill]] }
 0x26c   : > { %p2130_p3 = scmp.le.s32.totalorder %s4022_s21, 0 }
 0x26d   : > { %v1734_v7 = vld [vmem:[%s3497_s2] sm:$0x1] (!%p2130_p3) }
 0x26e   : > { %1733 = sbr.rel (%p2130_p3) target bundleno = 629 (0x275), region = 52  ;;  %v1737_v8 = vld [vmem:[%s3499_s1] sm:$0x1] (!%p2130_p3)  ;;  %v1735_v31 = vadd.f32 (!%p2130_p3), %v1734_v7, %v1654_v26 }
 0x26f   : > { %v1738_v28 = vadd.f32 (!%p2130_p3), %v1737_v8, %v1723_v30 }
 0x270   : > { %1736 = vst [vmem:[%s3497_s2] sm:$0x1] (!%p2130_p3), %v1735_v31 }
 0x271   : > { %1739 = vst [vmem:[%s3499_s1] sm:$0x1] (!%p2130_p3), %v1738_v28 }
 0x275 PF: > { %s4023_s28 = sld [smem:[#allocation22_spill]]  ;;  %s4024_s29 = sld [smem:[#allocation21_spill]] }
 0x276   : > { %s1745_s3 = sand.u32 1, %s3258_s8   ;;  %s4025_s26 = sld [smem:[#allocation35_spill]] }
 0x277   : > { %s1784_s11 = sshll.u32 %s3497_s2, 4  ;;  %s3774_s21 = scalar_lea.sflag [#allocation10], %s1745_s3  ;;  %s3771_s11 = int_to_ptr.vmem [resolvable:$true] %s1784_s11 }
 0x278   : > { %s2872_s14 = scalar_lea.vmem %s3771_s11, 16  ;;  %p4027_p1 = scmp.ne.s32.totalorder %s4008_s24, 0 }
 0x279   : > { %p2873_p11 = scmp.ne.s32.totalorder %s3771_s11, %s2872_s14  ;;  %s3133_s8 = smov [#allocation9]  }
 0x27a   : > { %s2876_s6 = sshll.u32 %s3133_s8, 4  ;;  %s2877_s6 = int_to_ptr.vmem [resolvable:$false] %s2876_s6 }
 0x27b   : > { %s3965_s4 = sshll.u32 %s4023_s28, 4  ;;  %s2492_s13 = smul.u32 96, %s4024_s29 }
 0x27c   : > { %s4026_s0 = smov %s4025_s26  ;;  %s3768_s5 = scalar_lea.hbm %s4025_s26, %s3965_s4 }
 0x27d   : > { %p2874_p2 = pnand %p2873_p11, %p4027_p1  ;;  %s2878_s10 = scalar_lea.vmem %s2877_s6, 32 }
 0x27e   : > { %p2879_p10 = scmp.lt.s32.totalorder %s3771_s11, %s2877_s6  ;;  %p2880_p13 = scmp.lt.s32.totalorder %s2878_s10, %s2872_s14 }
 0x27f   : > { %p2875_p4 = pneg %p2874_p2 }
 0x280   : > { %p2881_p8 = por %p2880_p13, %p2879_p10 }
 0x282   : > { %p2882_p0 = pnand %p2881_p8, %p2875_p4 }
 0x284   : > { %2885 = shalt.err (!%p2882_p0)
}
 0x285   : > { %s2886_s2 = scalar_lea.hbm %s3768_s5, 16  ;;  %s2890_s26 = scalar_lea.hbm %s4026_s0, 48 }
 0x286   : > { %p2887_p7 = scmp.ne.s32.totalorder %s3768_s5, %s2886_s2  ;;  %p2891_p12 = scmp.lt.u32.totalorder %s3768_s5, %s4026_s0 }
 0x287   : > { %p2892_p9 = scmp.lt.u32.totalorder %s2890_s26, %s2886_s2  ;;  %p2894_p11 = scmp.lt.u32.totalorder %s2886_s2, %s3768_s5 }
 0x288   : > { %p2888_p6 = pnand %p2887_p7, %p4027_p1 }
 0x289   : > { %p2893_p3 = por %p2892_p9, %p2891_p12 }
 0x28a   : > { %p2889_p5 = pneg %p2888_p6 }
 0x28b   : > { %p2895_p2 = por %p2894_p11, %p2893_p3 }
 0x28d   : > { %p2896_p4 = pnand %p2895_p2, %p2889_p5 }
 0x28f   : > { %2899 = shalt.err (!%p2896_p4)
}
 0x290   : > { %2498 = dma.vmem_to_hbm [thread:$0]  (%p4027_p1), %s3771_s11, 16, %s3768_s5, %s3774_s21  }
 0x291   : > { %s1761_s14 = sadd.s32 %s4023_s28, %s2492_s13  ;;  %s1766_s10 = sshll.u32 %s3495_s9, 4  ;;  %s3802_s10 = int_to_ptr.vmem [resolvable:$true] %s1766_s10 }
 0x292   : > { %s2134_s3 = sshll.u32 %s1761_s14, 6  ;;  %s4028_s26 = sld [smem:[#allocation34_spill]] }
 0x293   : > { %s4030_s4 = sand.u32 1, %s3066_s19   ;;  %s2900_s30 = scalar_lea.vmem %s3802_s10, 2048 }
 0x294   : > { %s3811_s0 = scalar_lea.sflag [#allocation5], %s4030_s4  ;;  %p2901_p10 = scmp.ne.s32.totalorder %s3802_s10, %s2900_s30 }
 0x295   : > { %p4031_p13 = scmp.ne.s32.totalorder %s4003_s25, 0  ;;  %s3134_s9 = smov [#allocation8]  }
 0x296   : > { %s2904_s29 = sshll.u32 %s3134_s9, 4  ;;  %s2905_s29 = int_to_ptr.vmem [resolvable:$false] %s2904_s29 }
 0x297   : > { %p2902_p8 = pnand %p2901_p10, %p4031_p13  ;;  %s2906_s5 = scalar_lea.vmem %s2905_s29, 4096 }
 0x298   : > { %s4029_s8 = smov %s4028_s26  ;;  %s3807_s6 = scalar_lea.hbm %s4028_s26, %s2134_s3 }
 0x299   : > { %p2903_p0 = pneg %p2902_p8  ;;  %p2907_p7 = scmp.lt.s32.totalorder %s3802_s10, %s2905_s29 }
 0x29a   : > { %p2908_p6 = scmp.lt.s32.totalorder %s2906_s5, %s2900_s30 }
 0x29c   : > { %p2909_p5 = por %p2908_p6, %p2907_p7 }
 0x29e   : > { %p2910_p12 = pnand %p2909_p5, %p2903_p0 }
 0x2a0   : > { %2913 = shalt.err (!%p2910_p12)
}
 0x2a1   : > { %s2914_s4 = scalar_lea.hbm %s3807_s6, 2048  ;;  %s2918_s14 = scalar_lea.hbm %s4029_s8, 12288 }
 0x2a2   : > { %p2915_p9 = scmp.ne.s32.totalorder %s3807_s6, %s2914_s4  ;;  %p2919_p2 = scmp.lt.u32.totalorder %s3807_s6, %s4029_s8 }
 0x2a3   : > { %p2920_p4 = scmp.lt.u32.totalorder %s2918_s14, %s2914_s4  ;;  %p2922_p8 = scmp.lt.u32.totalorder %s2914_s4, %s3807_s6 }
 0x2a4   : > { %p2916_p3 = pnand %p2915_p9, %p4031_p13 }
 0x2a5   : > { %p2921_p10 = por %p2920_p4, %p2919_p2 }
 0x2a6   : > { %p2917_p11 = pneg %p2916_p3 }
 0x2a7   : > { %p2923_p0 = por %p2922_p8, %p2921_p10 }
 0x2a9   : > { %p2924_p7 = pnand %p2923_p0, %p2917_p11 }
 0x2ab   : > { %2927 = shalt.err (!%p2924_p7)
}
 0x2ac   : > { %s3135_s30 = smov 64   ;;  %s3136_s16 = smov 192  }
 0x2ad   : > { %s3137_s26 = smov 4   ;;  %s4032_s9 = sshll.u32 %s4023_s28, 4 }
 0x2ae   : > { %2497 = dma.vmem_to_hbm [thread:$0]  (%p4031_p13), %s3802_s10, 2048, %s3807_s6, %s3811_s0, %s3135_s30, %s3136_s16, %s3137_s26  }
 0x2af   : > { %s4033_s11 = sld [smem:[#allocation36_spill]]  ;;  %s1799_s13 = sshll.u32 %s3499_s1, 4  ;;  %s1800_s13 = int_to_ptr.vmem [resolvable:$true] %s1799_s13 }
 0x2b0   : > { %s2928_s14 = scalar_lea.vmem %s1800_s13, 16  ;;  %s3138_s3 = smov [#allocation11]  }
 0x2b1   : > { %p2929_p6 = scmp.ne.s32.totalorder %s1800_s13, %s2928_s14  ;;  %s2932_s2 = sshll.u32 %s3138_s3, 4  ;;  %s2933_s2 = int_to_ptr.vmem [resolvable:$false] %s2932_s2 }
 0x2b2   : > { %s2934_s8 = scalar_lea.vmem %s2933_s2, 32  ;;  %p2935_p9 = scmp.lt.s32.totalorder %s1800_s13, %s2933_s2 }
 0x2b3   : > { %p2930_p5 = pnand %p2929_p6, %p4027_p1  ;;  %p2936_p3 = scmp.lt.s32.totalorder %s2934_s8, %s2928_s14 }
 0x2b5   : > { %s3840_s4 = scalar_lea.hbm %s4033_s11, %s4032_s9  ;;  %p2931_p12 = pneg %p2930_p5 }
 0x2b6   : > { %p2937_p13 = por %p2936_p3, %p2935_p9 }
 0x2b8   : > { %p2938_p11 = pnand %p2937_p13, %p2931_p12 }
 0x2ba   : > { %2941 = shalt.err (!%p2938_p11)
}
 0x2bb   : > { %s2942_s25 = scalar_lea.hbm %s3840_s4, 16  ;;  %s2946_s0 = scalar_lea.hbm %s4033_s11, 48 }
 0x2bc   : > { %p2943_p2 = scmp.ne.s32.totalorder %s3840_s4, %s2942_s25  ;;  %p2947_p8 = scmp.lt.u32.totalorder %s3840_s4, %s4033_s11 }
 0x2bd   : > { %p2948_p0 = scmp.lt.u32.totalorder %s2946_s0, %s2942_s25  ;;  %p2950_p6 = scmp.lt.u32.totalorder %s2942_s25, %s3840_s4 }
 0x2be   : > { %p2944_p4 = pnand %p2943_p2, %p4027_p1 }
 0x2bf   : > { %p2949_p7 = por %p2948_p0, %p2947_p8 }
 0x2c0   : > { %p2945_p10 = pneg %p2944_p4 }
 0x2c1   : > { %p2951_p5 = por %p2950_p6, %p2949_p7 }
 0x2c3   : > { %p2952_p12 = pnand %p2951_p5, %p2945_p10 }
 0x2c5   : > { %2955 = shalt.err (!%p2952_p12)
}
 0x2c6   : > { %2499 = dma.vmem_to_hbm [thread:$0]  (%p4027_p1), %s1800_s13, 16, %s3840_s4, %s3774_s21  }
 0x2c7 PF: > { %s4034_s8 = sld [smem:[#allocation16_spill]]  ;;  %p2521_p9 = scmp.ge.s32.totalorder %s3122_s7, 2 }
 0x2c8   : > { %s1811_s30 = sand.u32 1, %s3062_s18  }
 0x2c9   : > { %s1812_s16 = scalar_lea.sflag [#allocation5], %s1811_s30 }
 0x2cd   : > { %p4035_p3 = scmp.ne.s32.totalorder %s4034_s8, 0 }
 0x2cf   : > { %p2511_p13 = pnand %p2521_p9, %p4035_p3 }
 0x2d1   : > { %3041 = dma.done.wait (!%p2511_p13), %s1812_s16, 2048  }
 0x2d2   : > { %3043 = vsyncadd (!%p2511_p13), %s1812_s16, 4294965248  ;;  %s4036_s26 = sadd.s32 4294967294, %s3122_s7   ;;  %p4037_p11 = scmp.ne.s32.totalorder %s4009_s27, 0 }
 0x2d3   : > { %s1820_s9 = sand.u32 1, %s4036_s26  }
 0x2d4   : > { %p2514_p2 = pnand %p2521_p9, %p4037_p11  ;;  %s1821_s24 = scalar_lea.sflag [#allocation10], %s1820_s9 }
 0x2d6   : > { %3045 = dma.done.wait (!%p2514_p2), %s1821_s24, 32  }
 0x2d7   : > { %3047 = vsyncadd (!%p2514_p2), %s1821_s24, 4294967264  ;;  %s27_s7 = sadd.s32 1, %s3122_s7   ;;  %s4039_s18 = sld [smem:[#allocation17_spill]] }
 0x2d8   : > { %p3870_p1 = scmp.ge.s32.totalorder %s27_s7, 20   ;;  %s4040_s29 = smov %s3405_s15 }
 0x2d9   : > { %s4041_s5 = sld [smem:[#allocation31_spill]]  ;;  %s4042_s24 = sld [smem:[#allocation18_spill]] }
 0x2da   : > { %s4043_s25 = sld [smem:[#allocation19_spill]]  ;;  %s4044_s26 = sld [smem:[#allocation29_spill]] }
 0x2db   : > { %s4045_s27 = sld [smem:[#allocation23_spill]]  ;;  %s4046_s28 = sld [smem:[#allocation24_spill]] }
 0x2dc   : > { %s4047_s4 = sld [smem:[#allocation25_spill]]  ;;  %s4048_s30 = sld [smem:[#allocation26_spill]] }
 0x2dd   : > { %s4049_s15 = smov %s4039_s18  ;;  %s4050_s13 = sld [smem:[#allocation27_spill]] }
 0x2de   : > { %s4051_s16 = smov %s3058_s17  ;;  %s4052_s6 = sld [smem:[#allocation30_spill]] }
 0x2df   : > { %s4053_s17 = smov %s3415_s12  ;;  %s4054_s18 = smov %s3066_s19 }
 0x2e0   : > { %s4056_s19 = smov %s3070_s20  ;;  %s4057_s20 = smov %s4040_s29 }
 0x2e1   : > { %s4058_s21 = smov %s3078_s22  ;;  %s4059_s22 = smov %s3082_s23 }
 0x2e2   : > { %s4060_s23 = smov %s4041_s5  ;;  %s4061_s29 = smov %s4047_s4 }
 0x2e3   : > { %s4062_s5 = smov %s4050_s13  ;;  %26 = sbr.rel (!%p3870_p1) target bundleno = 23 (0x17), region = 134 }
 0x2ea   :  { %1833 = vsyncpa [#allocation4], 1 }
 0x2eb   :  { %1835 = vsyncpa [#allocation4 + $0x1], 1 }
 0x2ec   :  { %1836 = vsyncpa [#allocation7], 1 }
 0x2ed   :  { %1838 = vsyncpa [#allocation7 + $0x1], 1 }
 0x2ee   :  { %1839 = vsyncpa [#allocation5], 1 }
 0x2ef   :  { %1841 = vsyncpa [#allocation5 + $0x1], 1 }
 0x2f0   :  { %1842 = vsyncpa [#allocation10], 1 }
 0x2f1   :  { %1844 = vsyncpa [#allocation10 + $0x1], 1 }

</bundles_post_ra>
